<compile_context>
chip_gen: v7x
topology: tpu7x:2x2x1
jax: 0.10.0
libtpu: 0.0.40
codegen_flags: <defaults>
</compile_context>

<pallas_src>
import math

import jax
import jax.numpy as jnp
from jax.experimental import pallas as pl
from jax.experimental.pallas import tpu as pltpu


def feed_forward_kernel(x_ref, w1_ref, b1_ref, w2_ref, b2_ref, o_ref, acc_ref):
    f = pl.program_id(2)

    @pl.when(f == 0)
    def _():
        acc_ref[...] = jnp.zeros_like(acc_ref)

    x = x_ref[0]                                      # (block_s, D), native dtype

    # linear_1 tile: (block_s, block_f), f32 accumulation on the MXU
    h = jnp.dot(x, w1_ref[...], preferred_element_type=jnp.float32)
    h = h + b1_ref[...].astype(jnp.float32)

    # exact erf GELU (F.gelu default), computed in f32
    h = 0.5 * h * (1.0 + jax.lax.erf(h * (1.0 / math.sqrt(2.0))))

    # dropout is identity (eval mode)

    # partial linear_2: contract this d_ff tile into the f32 accumulator
    acc_ref[...] += jnp.dot(h.astype(x.dtype), w2_ref[...],
                            preferred_element_type=jnp.float32)

    @pl.when(f == pl.num_programs(2) - 1)
    def _():
        o_ref[0] = (acc_ref[...] + b2_ref[...].astype(jnp.float32)).astype(o_ref.dtype)


def feed_forward(x, w1, b1, w2, b2, *, block_s=512, block_f=1024):
    """y = (gelu(x @ w1 + b1)) @ w2 + b2  with x: (B, S, D)."""
    B, S, D = x.shape
    D_FF = w1.shape[1]
    block_s = min(block_s, S)
    block_f = min(block_f, D_FF)
    assert S % block_s == 0, "seq length must be divisible by block_s"
    assert D_FF % block_f == 0, "d_ff must be divisible by block_f"

    grid = (B, S // block_s, D_FF // block_f)
    return pl.pallas_call(
        feed_forward_kernel,
        out_shape=jax.ShapeDtypeStruct((B, S, D), x.dtype),
        grid=grid,
        in_specs=[
            pl.BlockSpec((1, block_s, D), lambda b, s, f: (b, s, 0)),  # x (revisited over f)
            pl.BlockSpec((D, block_f),    lambda b, s, f: (0, f)),     # w1 tile
            pl.BlockSpec((1, block_f),    lambda b, s, f: (0, f)),     # b1 tile
            pl.BlockSpec((block_f, D),    lambda b, s, f: (f, 0)),     # w2 tile
            pl.BlockSpec((1, D),          lambda b, s, f: (0, 0)),     # b2
        ],
        out_specs=pl.BlockSpec((1, block_s, D), lambda b, s, f: (b, s, 0)),
        scratch_shapes=[pltpu.VMEM((block_s, D), jnp.float32)],
        compiler_params=pltpu.CompilerParams(
            dimension_semantics=("parallel", "parallel", "arbitrary"),
            vmem_limit_bytes=64 * 1024 * 1024,
        ),
    )(x, w1, b1, w2, b2)


if __name__ == "__main__":
    # Small but lane-dense shapes (d_model / d_ff multiples of 128).
    B, S, D, D_MULT = 2, 256, 128, 4
    D_FF = D * D_MULT

    key = jax.random.PRNGKey(0)
    kx, k1, k2, k3, k4 = jax.random.split(key, 5)
    x = jax.random.normal(kx, (B, S, D), jnp.float32)

    lim1 = 1.0 / math.sqrt(D)
    lim2 = 1.0 / math.sqrt(D_FF)
    w1 = jax.random.uniform(k1, (D, D_FF), jnp.float32, -lim1, lim1)
    b1 = jax.random.uniform(k2, (1, D_FF), jnp.float32, -lim1, lim1)
    w2 = jax.random.uniform(k3, (D_FF, D), jnp.float32, -lim2, lim2)
    b2 = jax.random.uniform(k4, (1, D), jnp.float32, -lim2, lim2)

    # Small blocks here so the test exercises both the seq tiling and the
    # d_ff reduction/accumulator path (grid = (2, 2, 2)).
    out = feed_forward(x, w1, b1, w2, b2, block_s=128, block_f=256)
    out = jax.block_until_ready(out)

    # Pure-JAX reference (module in eval mode).
    h = x @ w1 + b1
    h = 0.5 * h * (1.0 + jax.lax.erf(h / math.sqrt(2.0)))
    ref = h @ w2 + b2

    assert out.shape == (B, S, D)
    err = float(jnp.max(jnp.abs(out - ref)))
    assert jnp.allclose(out, ref, rtol=1e-4, atol=1e-4), f"max abs err {err}"

    print("KERNEL_OK")
</pallas_src>

<mosaic_0001>
module attributes {stable_mosaic.version = 11 : i64} {
  func.func @feed_forward_kernel(%arg0: i32, %arg1: i32, %arg2: i32, %arg3: memref<1x128x128xf32, #tpu.memory_space<vmem>>, %arg4: memref<128x256xf32, #tpu.memory_space<vmem>>, %arg5: memref<1x256xf32, #tpu.memory_space<vmem>>, %arg6: memref<256x128xf32, #tpu.memory_space<vmem>>, %arg7: memref<1x128xf32, #tpu.memory_space<vmem>>, %arg8: memref<1x128x128xf32, #tpu.memory_space<vmem>>, %arg9: memref<128x128xf32, #tpu.memory_space<vmem>>) attributes {dimension_semantics = [#tpu.dimension_semantics<parallel>, #tpu.dimension_semantics<parallel>, #tpu.dimension_semantics<arbitrary>], iteration_bounds = array<i64: 2, 2, 2>, scalar_prefetch = 0 : i64, scratch_operands = 1 : i64, tpu.core_type = #tpu.core_type<tc>, window_params = [{transform_indices = @transform_0, window_bounds = array<i64: 1, 128, 128>}, {transform_indices = @transform_1, window_bounds = array<i64: 128, 256>}, {transform_indices = @transform_2, window_bounds = array<i64: 1, 256>}, {transform_indices = @transform_3, window_bounds = array<i64: 256, 128>}, {pipeline_mode = #tpu.pipeline_mode<synchronous>, transform_indices = @transform_4, window_bounds = array<i64: 1, 128>}, {transform_indices = @transform_5, window_bounds = array<i64: 1, 128, 128>}]} {
    %c0_i32 = arith.constant 0 : i32
    %0 = arith.cmpi eq, %arg2, %c0_i32 : i32
    %1 = arith.extui %0 : i1 to i32
    %c0_i32_0 = arith.constant 0 : i32
    %2 = arith.cmpi ne, %1, %c0_i32_0 : i32
    scf.if %2 {
      %cst_18 = arith.constant 0.000000e+00 : f32
      %26 = vector.broadcast %cst_18 : f32 to vector<128x128xf32>
      %c0_19 = arith.constant 0 : index
      %c0_20 = arith.constant 0 : index
      %27 = vector.load %arg9[%c0_19, %c0_20] : memref<128x128xf32, #tpu.memory_space<vmem>>, vector<128x128xf32>
      tpu.vector_store %arg9[%c0_19, %c0_20], %26 {strides = array<i32>} : memref<128x128xf32, #tpu.memory_space<vmem>>, vector<128x128xf32>,
    } else {
    }
    %c0 = arith.constant 0 : index
    %c0_1 = arith.constant 0 : index
    %c0_2 = arith.constant 0 : index
    %3 = vector.load %arg3[%c0, %c0_1, %c0_2] : memref<1x128x128xf32, #tpu.memory_space<vmem>>, vector<1x128x128xf32>
    %4 = vector.shape_cast %3 : vector<1x128x128xf32> to vector<128x128xf32>
    %c0_3 = arith.constant 0 : index
    %c0_4 = arith.constant 0 : index
    %5 = vector.load %arg4[%c0_3, %c0_4] : memref<128x256xf32, #tpu.memory_space<vmem>>, vector<128x256xf32>
    %cst = arith.constant dense<0.000000e+00> : vector<128x256xf32>
    %6 = tpu.matmul %4, %5, %cst {dimension_numbers = #tpu.dot_dimension_numbers<[1], [0], [0], [1], [0, 0, 1, 1], [], []>} : vector<128x128xf32>, vector<128x256xf32>, vector<128x256xf32> -> vector<128x256xf32>
    %c0_5 = arith.constant 0 : index
    %c0_6 = arith.constant 0 : index
    %7 = vector.load %arg5[%c0_5, %c0_6] : memref<1x256xf32, #tpu.memory_space<vmem>>, vector<1x256xf32>
    %8 = vector.broadcast %7 : vector<1x256xf32> to vector<128x256xf32>
    %9 = arith.addf %6, %8 : vector<128x256xf32>
    %cst_7 = arith.constant 5.000000e-01 : f32
    %10 = vector.broadcast %cst_7 : f32 to vector<128x256xf32>
    %11 = arith.mulf %10, %9 : vector<128x256xf32>
    %cst_8 = arith.constant 0.707106769 : f32
    %12 = vector.broadcast %cst_8 : f32 to vector<128x256xf32>
    %13 = arith.mulf %9, %12 : vector<128x256xf32>
    %14 = math.erf %13 : vector<128x256xf32>
    %cst_9 = arith.constant 1.000000e+00 : f32
    %15 = vector.broadcast %cst_9 : f32 to vector<128x256xf32>
    %16 = arith.addf %15, %14 : vector<128x256xf32>
    %17 = arith.mulf %11, %16 : vector<128x256xf32>
    %c0_10 = arith.constant 0 : index
    %c0_11 = arith.constant 0 : index
    %18 = vector.load %arg9[%c0_10, %c0_11] : memref<128x128xf32, #tpu.memory_space<vmem>>, vector<128x128xf32>
    %c0_12 = arith.constant 0 : index
    %c0_13 = arith.constant 0 : index
    %19 = vector.load %arg6[%c0_12, %c0_13] : memref<256x128xf32, #tpu.memory_space<vmem>>, vector<256x128xf32>
    %cst_14 = arith.constant dense<0.000000e+00> : vector<128x128xf32>
    %20 = tpu.matmul %17, %19, %cst_14 {dimension_numbers = #tpu.dot_dimension_numbers<[1], [0], [0], [1], [0, 0, 1, 1], [], []>} : vector<128x256xf32>, vector<256x128xf32>, vector<128x128xf32> -> vector<128x128xf32>
    %21 = arith.addf %18, %20 : vector<128x128xf32>
    %c0_15 = arith.constant 0 : index
    %c0_16 = arith.constant 0 : index
    %22 = vector.load %arg9[%c0_15, %c0_16] : memref<128x128xf32, #tpu.memory_space<vmem>>, vector<128x128xf32>
    tpu.vector_store %arg9[%c0_15, %c0_16], %21 {strides = array<i32>} : memref<128x128xf32, #tpu.memory_space<vmem>>, vector<128x128xf32>,
    %c1_i32 = arith.constant 1 : i32
    %23 = arith.cmpi eq, %arg2, %c1_i32 : i32
    %24 = arith.extui %23 : i1 to i32
    %c0_i32_17 = arith.constant 0 : i32
    %25 = arith.cmpi ne, %24, %c0_i32_17 : i32
    scf.if %25 {
      %c0_18 = arith.constant 0 : index
      %c0_19 = arith.constant 0 : index
      %26 = vector.load %arg9[%c0_18, %c0_19] : memref<128x128xf32, #tpu.memory_space<vmem>>, vector<128x128xf32>
      %c0_20 = arith.constant 0 : index
      %c0_21 = arith.constant 0 : index
      %27 = vector.load %arg7[%c0_20, %c0_21] : memref<1x128xf32, #tpu.memory_space<vmem>>, vector<1x128xf32>
      %28 = vector.broadcast %27 : vector<1x128xf32> to vector<128x128xf32>
      %29 = arith.addf %26, %28 : vector<128x128xf32>
      %c0_22 = arith.constant 0 : index
      %c0_23 = arith.constant 0 : index
      %c0_24 = arith.constant 0 : index
      %30 = vector.load %arg8[%c0_22, %c0_23, %c0_24] : memref<1x128x128xf32, #tpu.memory_space<vmem>>, vector<1x128x128xf32>
      %31 = vector.shape_cast %30 : vector<1x128x128xf32> to vector<128x128xf32>
      %32 = vector.shape_cast %29 : vector<128x128xf32> to vector<1x128x128xf32>
      tpu.vector_store %arg8[%c0_22, %c0_23, %c0_24], %32 {strides = array<i32>} : memref<1x128x128xf32, #tpu.memory_space<vmem>>, vector<1x128x128xf32>,
    } else {
    }
    return
  }
  func.func @transform_0(%arg0: i32, %arg1: i32, %arg2: i32) -> (i32, i32, i32) {
    %c0_i32 = arith.constant 0 : i32
    %c0_i32_0 = arith.constant 0 : i32
    return %arg0, %arg1, %c0_i32 : i32, i32, i32
  }
  func.func @transform_1(%arg0: i32, %arg1: i32, %arg2: i32) -> (i32, i32) {
    %c0_i32 = arith.constant 0 : i32
    %c0_i32_0 = arith.constant 0 : i32
    return %c0_i32, %arg2 : i32, i32
  }
  func.func @transform_2(%arg0: i32, %arg1: i32, %arg2: i32) -> (i32, i32) {
    %c0_i32 = arith.constant 0 : i32
    %c0_i32_0 = arith.constant 0 : i32
    return %c0_i32, %arg2 : i32, i32
  }
  func.func @transform_3(%arg0: i32, %arg1: i32, %arg2: i32) -> (i32, i32) {
    %c0_i32 = arith.constant 0 : i32
    %c0_i32_0 = arith.constant 0 : i32
    return %arg2, %c0_i32 : i32, i32
  }
  func.func @transform_4(%arg0: i32, %arg1: i32, %arg2: i32) -> (i32, i32) {
    %c0_i32 = arith.constant 0 : i32
    %c0_i32_0 = arith.constant 0 : i32
    %c0_i32_1 = arith.constant 0 : i32
    return %c0_i32, %c0_i32_0 : i32, i32
  }
  func.func @transform_5(%arg0: i32, %arg1: i32, %arg2: i32) -> (i32, i32, i32) {
    %c0_i32 = arith.constant 0 : i32
    %c0_i32_0 = arith.constant 0 : i32
    return %arg0, %arg1, %c0_i32 : i32, i32, i32
  }
}

</mosaic_0001>

<bundles_post_ra>
// kernel: tpu_custom_call.1
= control target key start
LH: loop header
LB: loop body
LE: loop exit
PB: predicated region body
PF: predicated region fallthrough
CT: control target
= control target key end

     0   :  { %s2722_s0 = inlined_call_operand.hbm [shape: f32[2,256,128], index: 0, kind: input, shape index: {}]   ;;  %s2723_s1 = inlined_call_operand.hbm [shape: f32[128,512], index: 1, kind: input, shape index: {}]   ;;  %s2724_s2 = inlined_call_operand.hbm [shape: f32[1,512], index: 2, kind: input, shape index: {}]   ;;  %s2725_s3 = inlined_call_operand.hbm [shape: f32[512,128], index: 3, kind: input, shape index: {}]   ;;  %s2726_s4 = inlined_call_operand.hbm [shape: f32[1,128], index: 4, kind: input, shape index: {}]   ;;  %s2727_s5 = inlined_call_operand.hbm [shape: f32[2,256,128], index: 5, kind: output, shape index: {}]  }
   0x1   :  { %2752 = sst [smem:[#allocation31_spill]] %s2723_s1 }
   0x2   :  { %2753 = sst [smem:[#allocation32_spill]] %s2726_s4 }
   0x3   :  { %2754 = sst [smem:[#allocation33_spill]] %s2727_s5 }
   0x4   :  { %10 = vsyncpa [#allocation4], 0 }
   0x5   :  { %12 = vsyncpa [#allocation4 + $0x1], 0 }
   0x6   :  { %13 = vsyncpa [#allocation7], 0 }
   0x7   :  { %15 = vsyncpa [#allocation7 + $0x1], 0 }
   0x8   :  { %16 = vsyncpa [#allocation10], 0 }
   0x9   :  { %18 = vsyncpa [#allocation10 + $0x1], 0 }
   0xa   :  { %19 = vsyncpa [#allocation5], 0 }
   0xb   :  { %21 = vsyncpa [#allocation5 + $0x1], 0  ;;  %s2015_s18 = smov 0   ;;  %s2017_s19 = smov 0  }
   0xc   :  { %s2019_s20 = smov 0   ;;  %s2021_s21 = smov 0  }
   0xd   :  { %s2023_s22 = smov 0   ;;  %s2025_s23 = smov 0  }
   0xe   :  { %s2027_s24 = smov 0   ;;  %s2029_s25 = smov 0  }
   0xf   :  { %s2031_s26 = smov 0   ;;  %s2033_s27 = smov 0  }
  0x10   :  { %s2035_s28 = smov 0   ;;  %s2037_s29 = smov 0  }
  0x11   :  { %s2039_s30 = smov 0  }
  0x12 LB: > { %2755 = sst [smem:[#allocation18_spill]] %s1924_s19  ;;  %s2079_s6 = sadd.s32 4294967295, %s1968_s30   ;;  %s1968_s30 = sphi %s2039_s30, %s27_s30   ;;  %s1964_s29 = sphi %s2037_s29, %s2828_s29   ;;  %s1960_s28 = sphi %s2035_s28, %s2827_s28   ;;  %s1956_s27 = sphi %s2033_s27, %s2826_s27   ;;  %s1952_s26 = sphi %s2031_s26, %s2825_s26   ;;  %s1948_s25 = sphi %s2029_s25, %s2824_s25   ;;  %s1944_s24 = sphi %s2027_s24, %s2823_s24   ;;  %s1940_s23 = sphi %s2025_s23, %s2822_s23   ;;  %s1936_s22 = sphi %s2023_s22, %s2821_s22   ;;  %s1932_s21 = sphi %s2021_s21, %s2820_s21   ;;  %s1928_s20 = sphi %s2019_s20, %s2819_s20   ;;  %s1924_s19 = sphi %s2017_s19, %s2818_s19   ;;  %s1920_s18 = sphi %s2015_s18, %s2813_s18  }
  0x13   : > { %2756 = sst [smem:[#allocation19_spill]] %s1932_s21  ;;  %s1273_s7 = sadd.s32 4294967294, %s1968_s30  }
  0x14   : > { %2757 = sst [smem:[#allocation20_spill]] %s1944_s24  ;;  %p62_p0 = scmp.ne.s32.totalorder %s1940_s23, %s1936_s22 }
  0x15   : > { %2758 = sst [smem:[#allocation21_spill]] %s1948_s25  ;;  %p63_p1 = scmp.eq.s32.totalorder %s1968_s30, 0 }
  0x16   : > { %2759 = sst [smem:[#allocation22_spill]] %s1952_s26  ;;  %p68_p2 = scmp.ne.s32.totalorder %s1936_s22, %s1932_s21 }
  0x17   : > { %2760 = sst [smem:[#allocation23_spill]] %s2079_s6  ;;  %p2734_p3 = scmp.eq.s32.totalorder %s2079_s6, 0 }
  0x18   : > { %p2093_p4 = por %p63_p1, %p62_p0  ;;  %p88_p5 = scmp.ne.s32.totalorder %s1928_s20, %s1924_s19 }
  0x19   : > { %p2104_p6 = por %p2734_p3, %p68_p2  ;;  %p94_p7 = scmp.ne.s32.totalorder %s1924_s19, %s1920_s18 }
  0x1a   : > { %s2761_s10 = scalar_select %p2093_p4, 1, 0 }
  0x1b   : > { %s2762_s11 = scalar_select %p2104_p6, 1, 0 }
  0x1c   : > { %p2109_p8 = por %p88_p5, %p63_p1  ;;  %p193_p9 = scmp.eq.s32.totalorder %s2079_s6, 7 }
  0x1d   : > { %2763 = sst [smem:[#allocation24_spill]] %s2762_s11  ;;  %p2116_p10 = por %p94_p7, %p2734_p3 }
  0x1e   : > { %p199_p11 = scmp.eq.s32.totalorder %s1273_s7, 7  ;;  %p2123_p12 = por %p193_p9, %p62_p0 }
  0x1f   : > { %s2765_s13 = scalar_select %p2116_p10, 1, 0 }
  0x20   : > { %s2767_s14 = scalar_select %p2123_p12, 1, 0 }
  0x21   : > { %2766 = sst [smem:[#allocation25_spill]] %s2765_s13  ;;  %p1274_p13 = scmp.ge.s32.totalorder %s1968_s30, 1 }
  0x22   : > { %2768 = sst [smem:[#allocation26_spill]] %s2767_s14  ;;  %p2131_p1 = por %p199_p11, %p68_p2 }
  0x23   : > { %p206_p5 = scmp.lt.s32.totalorder %s1968_s30, 9  ;;  %s1970_s17 = smov [#allocation11]  }
  0x24   : > { %s2769_s15 = scalar_select %p2131_p1, 1, 0 }
  0x25   : > { %p2136_p6 = pnand %p1274_p13, %p206_p5  ;;  %s219_s18 = sshll.u32 %s1970_s17, 4  ;;  %s220_s18 = int_to_ptr.vmem [resolvable:$true] %s219_s18 }
  0x26   : > { %2770 = sst [smem:[#allocation27_spill]] %s2769_s15  ;;  %p2735_p7 = scmp.lt.s32.totalorder %s1968_s30, 8 }
  0x27   : > { %s2771_s16 = scalar_select %p2136_p6, 1, 0 }
  0x28   : > { %p1467_p0 = pneg %p2136_p6  ;;  %p2154_p2 = pnand %p2735_p7, %p2109_p8 }
  0x29   : > { %s2774_s4 = sld [smem:[#allocation32_spill]] }
  0x2a   : > { %p2146_p9 = pnand %p1467_p0, %p2734_p3 }
  0x2b   : > { %s2773_s9 = scalar_select %p2154_p2, 1, 0 }
  0x2c   : > { %p1672_p13 = pneg %p2146_p9 }
  0x2f   : > { %s1670_s17 = scalar_lea.hbm %s2774_s4, 16 }
  0x30   : > { %p1671_p11 = scmp.ne.s32.totalorder %s2774_s4, %s1670_s17  ;;  %p1677_p3 = scmp.lt.u32.totalorder %s1670_s17, %s2774_s4 }
  0x32   : > { %p1673_p5 = pnand %p1672_p13, %p1671_p11 }
  0x34   : > { %p1674_p0 = pneg %p1673_p5 }
  0x36   : > { %p1679_p8 = pnand %p1677_p3, %p1674_p0 }
  0x38   : > { %1682 = shalt.err (!%p1679_p8)
}
  0x39   : > { %s1683_s26 = scalar_lea.vmem %s220_s18, 16  ;;  %s1690_s21 = scalar_lea.vmem %s220_s18, 32 }
  0x3a   : > { %p1684_p7 = scmp.ne.s32.totalorder %s220_s18, %s1683_s26  ;;  %p1691_p10 = scmp.lt.s32.totalorder %s220_s18, %s220_s18 }
  0x3b   : > { %p1692_p6 = scmp.lt.s32.totalorder %s1690_s21, %s1683_s26 }
  0x3c   : > { %p1686_p1 = pnand %p1684_p7, %p1672_p13 }
  0x3d   : > { %p1693_p4 = por %p1692_p6, %p1691_p10 }
  0x3e   : > { %p1687_p12 = pneg %p1686_p1 }
  0x40   : > { %p1694_p2 = pnand %p1693_p4, %p1687_p12 }
  0x42   : > { %1697 = shalt.err (!%p1694_p2)
}
  0x43   : > { %1470 = dma.hbm_to_vmem [thread:$0]  (!%p2146_p9), %s2774_s4, 16, %s220_s18, [#allocation10]  }
  0x44   : > { %s39_s15 = sadd.s32 1, %s1956_s27  ;;  %s2740_s26 = sand.u32 1, %s1928_s20  }
  0x45   : > { %p2176_p3 = scmp.ge.s32.totalorder %s39_s15, 2  ;;  %s2182_s8 = sshll.u32 %s2740_s26, 8 }
  0x46   : > { %s1306_s17 = sshll.u32 %s1956_s27, 8  ;;  %s2777_s1 = sld [smem:[#allocation31_spill]] }
  0x47   : > { %s2775_s7 = scalar_select %p2176_p3, 1, 0 }
  0x48   : > { %s2830_s15 = smov (%p2176_p3, %s39_s15), 0  ;;  %s257_s5 = scalar_lea.vmem [#allocation6], %s2182_s8 }
  0x49   : > { %2776 = sst [smem:[#allocation28_spill]] %s2830_s15  ;;  %s264_s14 = sshll.u32 %s257_s5, 4  ;;  %s2197_s14 = int_to_ptr.vmem [resolvable:$true] %s264_s14 }
  0x4a   : > { %s78_s4 = ssub.s32 %s1956_s27, %s2830_s15  ;;  %s2778_s26 = sadd.s32 1, %s1928_s20 }
  0x4b   : > { %p79_p4 = scmp.eq.s32.totalorder %s78_s4, 0  ;;  %s2780_s24 = sand.u32 1, %s1968_s30  }
  0x4c   : > { %s2192_s18 = scalar_lea.hbm %s2777_s1, %s1306_s17  ;;  %s2206_s13 = scalar_lea.sflag [#allocation7], %s2780_s24 }
  0x4d   : > { %s2202_s25 = scalar_select %p79_p4, %s1928_s20, %s2778_s26  }
  0x4e   : > { %s1698_s12 = scalar_lea.hbm %s2192_s18, 4096  ;;  %p2781_p10 = scmp.ne.s32.totalorder %s2773_s9, 0 }
  0x4f   : > { %2779 = sst [smem:[#allocation29_spill]] %s2202_s25  ;;  %p1699_p6 = scmp.ne.s32.totalorder %s2192_s18, %s1698_s12 }
  0x50   : > { %p2212_p12 = pneg %p2781_p10  ;;  %s1703_s4 = scalar_lea.hbm %s2777_s1, 8192 }
  0x51   : > { %p1704_p9 = scmp.lt.u32.totalorder %s2192_s18, %s2777_s1  ;;  %p1705_p2 = scmp.lt.u32.totalorder %s1703_s4, %s1698_s12 }
  0x52   : > { %p1701_p1 = pnand %p2212_p12, %p1699_p6  ;;  %p1707_p13 = scmp.lt.u32.totalorder %s1698_s12, %s2192_s18 }
  0x53   : > { %p1706_p11 = por %p1705_p2, %p1704_p9 }
  0x54   : > { %p1702_p7 = pneg %p1701_p1 }
  0x55   : > { %p1708_p5 = por %p1707_p13, %p1706_p11 }
  0x57   : > { %p1709_p0 = pnand %p1708_p5, %p1702_p7 }
  0x59   : > { %1712 = shalt.err (!%p1709_p0)
}
  0x5a   : > { %s1713_s24 = scalar_lea.vmem %s2197_s14, 4096  ;;  %s1971_s21 = smov [#allocation6]  }
  0x5b   : > { %p1714_p8 = scmp.ne.s32.totalorder %s2197_s14, %s1713_s24  ;;  %s1718_s5 = sshll.u32 %s1971_s21, 4  ;;  %s1719_s5 = int_to_ptr.vmem [resolvable:$false] %s1718_s5 }
  0x5c   : > { %s1720_s15 = scalar_lea.vmem %s1719_s5, 8192  ;;  %p1721_p1 = scmp.lt.s32.totalorder %s2197_s14, %s1719_s5 }
  0x5d   : > { %p1716_p4 = pnand %p1714_p8, %p2212_p12  ;;  %p1722_p3 = scmp.lt.s32.totalorder %s1720_s15, %s1713_s24 }
  0x5f   : > { %p1717_p6 = pneg %p1716_p4  ;;  %p1723_p9 = por %p1722_p3, %p1721_p1 }
  0x61   : > { %p1724_p2 = pnand %p1723_p9, %p1717_p6 }
  0x63   : > { %1727 = shalt.err (!%p1724_p2)
}
  0x64   : > { %s1972_s12 = smov 512   ;;  %s1973_s4 = smov 256  }
  0x65   : > { %s1974_s26 = smov 16   ;;  %s42_s24 = sadd.s32 1, %s1960_s28 }
  0x66   : > { %1477 = dma.hbm_to_vmem [thread:$0]  (!%p2781_p10), %s2192_s18, 4096, %s2197_s14, %s2206_s13, %s1972_s12, %s1973_s4, %s1974_s26  }
  0x67   : > { %s46_s21 = sadd.s32 1, %s1964_s29  ;;  %p2783_p3 = scmp.ne.s32.totalorder %s2775_s7, 0 }
  0x68   : > { %s230_s5 = sand.u32 1, %s1940_s23   ;;  %s1278_s15 = sshll.u32 %s1960_s28, 4 }
  0x69   : > { %s2832_s24 = smov (!%p2783_p3, %s42_s24), %s1960_s28  ;;  %s1277_s1 = sshll.u32 %s230_s5, 7 }
  0x6a   : > { %p44_p7 = scmp.ge.s32.totalorder %s2832_s24, 2  ;;  %s1279_s25 = sshll.u32 %s1964_s29, 5 }
  0x6b   : > { %s240_s14 = sadd.s32 %s1279_s25, %s1278_s15  ;;  %s234_s12 = scalar_lea.vmem [#allocation3], %s1277_s1 }
  0x6c   : > { %s2834_s24 = smov (%p44_p7, %s2832_s24), 0  ;;  %s2836_s21 = smov (!%p44_p7, %s46_s21), %s1964_s29 }
  0x6d   : > { %s51_s18 = ssub.s32 %s1960_s28, %s2834_s24  ;;  %p48_p11 = scmp.ge.s32.totalorder %s2836_s21, 2 }
  0x6e   : > { %s1280_s7 = sshll.u32 %s240_s14, 7  ;;  %s243_s4 = sshll.u32 %s234_s12, 4  ;;  %s2256_s4 = int_to_ptr.vmem [resolvable:$true] %s243_s4 }
  0x6f   : > { %s2838_s21 = smov (%p48_p11, %s2836_s21), 0  ;;  %s2254_s6 = scalar_lea.hbm %s2722_s0, %s1280_s7 }
  0x70   : > { %2784 = sst [smem:[#allocation30_spill]] %s2838_s21  ;;  %s50_s11 = ssub.s32 %s1964_s29, %s2838_s21 }
  0x71   : > { %p2785_p13 = scmp.ne.s32.totalorder %s2761_s10, 0  ;;  %p2786_p5 = scmp.lt.s32.totalorder %s1968_s30, 8 }
  0x72   : > { %s52_s25 = sor.u32 %s51_s18, %s50_s11  ;;  %s2788_s19 = sand.u32 1, %s1928_s20  }
  0x73   : > { %p2264_p0 = pnand %p2786_p5, %p2785_p13  ;;  %p53_p8 = scmp.eq.s32.totalorder %s52_s25, 0 }
  0x74   : > { %s2270_s15 = sshll.u32 %s2788_s19, 1  ;;  %s2789_s14 = sadd.s32 1, %s1940_s23 }
  0x75   : > { %s2275_s7 = scalar_select %p53_p8, %s1940_s23, %s2789_s14  }
  0x76   : > { %s2277_s12 = scalar_lea.sflag [#allocation4], %s230_s5  ;;  %s1728_s26 = scalar_lea.hbm %s2254_s6, 2048 }
  0x77   : > { %p1729_p4 = scmp.ne.s32.totalorder %s2254_s6, %s1728_s26  ;;  %p1730_p6 = pneg %p2264_p0 }
  0x78   : > { %s1733_s11 = scalar_lea.hbm %s2722_s0, 8192  ;;  %p1734_p2 = scmp.lt.u32.totalorder %s2254_s6, %s2722_s0 }
  0x79   : > { %p1731_p1 = pnand %p1730_p6, %p1729_p4  ;;  %p1735_p3 = scmp.lt.u32.totalorder %s1733_s11, %s1728_s26 }
  0x7a   : > { %p1737_p11 = scmp.lt.u32.totalorder %s1728_s26, %s2254_s6 }
  0x7b   : > { %p1732_p9 = pneg %p1731_p1  ;;  %p1736_p7 = por %p1735_p3, %p1734_p2 }
  0x7d   : > { %p1738_p13 = por %p1737_p11, %p1736_p7 }
  0x7f   : > { %p1739_p5 = pnand %p1738_p13, %p1732_p9 }
  0x81   : > { %1742 = shalt.err (!%p1739_p5)
}
  0x82   : > { %s1743_s5 = scalar_lea.vmem %s2256_s4, 2048  ;;  %s1975_s21 = smov [#allocation3]  }
  0x83   : > { %p1744_p8 = scmp.ne.s32.totalorder %s2256_s4, %s1743_s5  ;;  %s1748_s19 = sshll.u32 %s1975_s21, 4  ;;  %s1749_s19 = int_to_ptr.vmem [resolvable:$false] %s1748_s19 }
  0x84   : > { %s1750_s14 = scalar_lea.vmem %s1749_s19, 4096  ;;  %p1751_p10 = scmp.lt.s32.totalorder %s2256_s4, %s1749_s19 }
  0x85   : > { %p1746_p4 = pnand %p1744_p8, %p1730_p6  ;;  %p1752_p2 = scmp.lt.s32.totalorder %s1750_s14, %s1743_s5 }
  0x87   : > { %p1747_p1 = pneg %p1746_p4  ;;  %p1753_p3 = por %p1752_p2, %p1751_p10 }
  0x89   : > { %p1754_p7 = pnand %p1753_p3, %p1747_p1 }
  0x8b   : > { %1757 = shalt.err (!%p1754_p7)
}
  0x8c   : > { %s1976_s26 = smov 128   ;;  %s1977_s10 = smov 8  }
  0x8d   : > { %1474 = dma.hbm_to_vmem [thread:$0]  (!%p2264_p0), %s2254_s6, 2048, %s2256_s4, %s2277_s12, %s1976_s26, %s1976_s26, %s1977_s10  }
  0x8e   : > { %s1307_s11 = sshll.u32 %s1956_s27, 5  ;;  %s278_s21 = scalar_lea.vmem [#allocation8], %s2270_s15 }
  0x8f   : > { %s2312_s5 = scalar_lea.hbm %s2724_s2, %s1307_s11  ;;  %s286_s19 = sshll.u32 %s278_s21, 4  ;;  %s287_s19 = int_to_ptr.vmem [resolvable:$true] %s286_s19 }
  0x90   : > { %s1758_s14 = scalar_lea.hbm %s2312_s5, 32  ;;  %s1763_s4 = scalar_lea.hbm %s2724_s2, 64 }
  0x91   : > { %p1759_p10 = scmp.ne.s32.totalorder %s2312_s5, %s1758_s14  ;;  %p1764_p0 = scmp.lt.u32.totalorder %s2312_s5, %s2724_s2 }
  0x92   : > { %p1765_p11 = scmp.lt.u32.totalorder %s1763_s4, %s1758_s14  ;;  %p1767_p5 = scmp.lt.u32.totalorder %s1758_s14, %s2312_s5 }
  0x93   : > { %p1761_p6 = pnand %p1759_p10, %p2212_p12 }
  0x94   : > { %p1766_p13 = por %p1765_p11, %p1764_p0 }
  0x95   : > { %p1762_p9 = pneg %p1761_p6 }
  0x96   : > { %p1768_p8 = por %p1767_p5, %p1766_p13 }
  0x98   : > { %p1769_p4 = pnand %p1768_p8, %p1762_p9 }
  0x9a   : > { %1772 = shalt.err (!%p1769_p4)
}
  0x9b   : > { %s1773_s15 = scalar_lea.vmem %s287_s19, 32  ;;  %s1978_s11 = smov [#allocation8]  }
  0x9c   : > { %p1774_p1 = scmp.ne.s32.totalorder %s287_s19, %s1773_s15  ;;  %s1778_s25 = sshll.u32 %s1978_s11, 4  ;;  %s1779_s25 = int_to_ptr.vmem [resolvable:$false] %s1778_s25 }
  0x9d   : > { %s1780_s21 = scalar_lea.vmem %s1779_s25, 64  ;;  %p1781_p7 = scmp.lt.s32.totalorder %s287_s19, %s1779_s25 }
  0x9e   : > { %p1776_p2 = pnand %p1774_p1, %p2212_p12  ;;  %p1782_p10 = scmp.lt.s32.totalorder %s1780_s21, %s1773_s15 }
  0xa0   : > { %p1777_p3 = pneg %p1776_p2  ;;  %p1783_p6 = por %p1782_p10, %p1781_p7 }
  0xa2   : > { %p1784_p0 = pnand %p1783_p6, %p1777_p3 }
  0xa4   : > { %1787 = shalt.err (!%p1784_p0)
}
  0xa5   : > { %p2790_p11 = scmp.ne.s32.totalorder %s2773_s9, 0  ;;  %s1308_s14 = sshll.u32 %s1956_s27, 12 }
  0xa6   : > { %s2337_s4 = scalar_lea.hbm %s2725_s3, %s1308_s14  ;;  %s297_s12 = scalar_lea.vmem [#allocation9], %s2182_s8 }
  0xa7   : > { %1480 = dma.hbm_to_vmem [thread:$0]  (!%p2790_p11), %s2312_s5, 32, %s287_s19, %s2206_s13  }
  0xa8   : > { %s304_s18 = sshll.u32 %s297_s12, 4  ;;  %s2791_s15 = sand.u32 1, %s1968_s30   ;;  %s2340_s18 = int_to_ptr.vmem [resolvable:$true] %s304_s18 }
  0xa9   : > { %s2344_s11 = scalar_lea.sflag [#allocation10], %s2791_s15  ;;  %s1788_s25 = scalar_lea.hbm %s2337_s4, 4096 }
  0xaa   : > { %p1789_p9 = scmp.ne.s32.totalorder %s2337_s4, %s1788_s25  ;;  %s1793_s19 = scalar_lea.hbm %s2725_s3, 8192 }
  0xab   : > { %p1794_p8 = scmp.lt.u32.totalorder %s2337_s4, %s2725_s3  ;;  %p1795_p4 = scmp.lt.u32.totalorder %s1793_s19, %s1788_s25 }
  0xac   : > { %p1791_p13 = pnand %p1789_p9, %p2212_p12  ;;  %p1797_p2 = scmp.lt.u32.totalorder %s1788_s25, %s2337_s4 }
  0xad   : > { %p1796_p1 = por %p1795_p4, %p1794_p8 }
  0xae   : > { %p1792_p5 = pneg %p1791_p13 }
  0xaf   : > { %p1798_p3 = por %p1797_p2, %p1796_p1 }
  0xb1   : > { %p1799_p7 = pnand %p1798_p3, %p1792_p5 }
  0xb3   : > { %1802 = shalt.err (!%p1799_p7)
}
  0xb4   : > { %s1803_s8 = scalar_lea.vmem %s2340_s18, 4096  ;;  %s1979_s1 = smov [#allocation9]  }
  0xb5   : > { %p1804_p10 = scmp.ne.s32.totalorder %s2340_s18, %s1803_s8  ;;  %s1808_s6 = sshll.u32 %s1979_s1, 4  ;;  %s1809_s6 = int_to_ptr.vmem [resolvable:$false] %s1808_s6 }
  0xb6   : > { %s1810_s12 = scalar_lea.vmem %s1809_s6, 8192  ;;  %p1811_p9 = scmp.lt.s32.totalorder %s2340_s18, %s1809_s6 }
  0xb7   : > { %p1806_p6 = pnand %p1804_p10, %p2212_p12  ;;  %p1812_p13 = scmp.lt.s32.totalorder %s1810_s12, %s1803_s8 }
  0xb9   : > { %p1807_p0 = pneg %p1806_p6  ;;  %p1813_p8 = por %p1812_p13, %p1811_p9 }
  0xbb   : > { %p1814_p4 = pnand %p1813_p8, %p1807_p0 }
  0xbd   : > { %1817 = shalt.err (!%p1814_p4)
}
  0xbe   : > { %1483 = dma.hbm_to_vmem [thread:$0]  (!%p2790_p11), %s2337_s4, 4096, %s2340_s18, %s2344_s11, %s1976_s26, %s1976_s26, %s1977_s10  }
  0xbf   : > { %p2792_p12 = scmp.ne.s32.totalorder %s2771_s16, 0 }
  0xc0   : > { %s2793_s17 = sld [smem:[#allocation24_spill]] (!%p2792_p12)  ;;  %s2374_s15 = sand.u32 (!%p2792_p12), 1, %s1936_s22  }
  0xc1   : > { %316 = sbr.rel (%p2792_p12) target bundleno = 820 (0x334), region = 40  ;;  %s1291_s25 = sshll.u32 (!%p2792_p12), %s2374_s15, 7 }
  0xc2   : > { %s319_s13 = scalar_lea.sflag (!%p2792_p12), [#allocation4], %s2374_s15  ;;  %s2378_s5 = scalar_lea.vmem (!%p2792_p12), [#allocation3], %s1291_s25 }
  0xc6   : > { %p2794_p5 = scmp.ne.s32.totalorder (!%p2792_p12), %s2793_s17, 0 }
  0xc8   : > { %1899 = dma.done.wait (%p2794_p5), %s319_s13, 2048  }
  0xc9   : > { %1901 = vsyncadd (%p2794_p5), %s319_s13, 4294965248  ;;  %s2795_s9 = sld [smem:[#allocation23_spill]]  ;;  %s2797_s10 = sld [smem:[#allocation25_spill]] }
  0xca   : > { %s2796_s26 = sld [smem:[#allocation18_spill]] }
  0xcf   : > { %s327_s16 = sand.u32 1, %s2795_s9   ;;  %p2798_p11 = scmp.ne.s32.totalorder %s2797_s10, 0 }
  0xd0   : > { %s329_s4 = sand.u32 1, %s2796_s26   ;;  %s328_s11 = scalar_lea.sflag [#allocation7], %s327_s16 }
  0xd1   : > { %s1292_s18 = sshll.u32 %s329_s4, 8 }
  0xd2   : > { %s2386_s19 = scalar_lea.vmem [#allocation6], %s1292_s18 }
  0xd3   : > { %1903 = dma.done.wait (%p2798_p11), %s328_s11, 4128  }
  0xd4   : > { %1905 = vsyncadd (%p2798_p11), %s328_s11, 4294963168  ;;  %s2392_s21 = sshll.u32 %s329_s4, 1  ;;  %s346_s8 = scalar_lea.sflag [#allocation10], %s327_s16 }
  0xd5   : > { %s340_s14 = scalar_lea.vmem [#allocation8], %s2392_s21  ;;  %s2395_s1 = scalar_lea.vmem [#allocation9], %s1292_s18 }
  0xd6   : > { %1907 = dma.done.wait (%p2798_p11), %s346_s8, 4096  }
  0xd7   : > { %1909 = vsyncadd (%p2798_p11), %s346_s8, 4294963200  ;;  %p2799_p1 = scmp.eq.s32.totalorder %s2795_s9, 0 }
  0xd9   : > { %1911 = dma.done.wait (%p2799_p1), [#allocation10], 16   ;;  %p2800_p2 = pmov %p2799_p1 }
  0xda   : > { %s2405_s6 = scalar_lea.vmem [#allocation12], %s1291_s25  ;;  %s2801_s12 = sld [smem:[#allocation20_spill]] }
  0xdb   : > { %1913 = vsyncadd (%p2800_p2), [#allocation10], 4294967280 }
  0xe0   : > { %p1297_p3 = scmp.ne.s32.totalorder %s2801_s12, 0 }
  0xe1   : > { %v1980_v0 = vmov (!%p1297_p3), 0.0  }
  0xe2   : > { %403 = sbr.rel (%p1297_p3) target bundleno = 234 (0xea), region = 64  ;;  %404 = vst [vmem:[#allocation2] sm:$0xff] (!%p1297_p3), %v1980_v0  ;;  %405 = vst [vmem:[#allocation2 + $0x8] sm:$0xff] (!%p1297_p3), %v1980_v0 }
  0xe3   : > { %406 = vst [vmem:[#allocation2 + $0x10] sm:$0xff] (!%p1297_p3), %v1980_v0  ;;  %407 = vst [vmem:[#allocation2 + $0x18] sm:$0xff] (!%p1297_p3), %v1980_v0 }
  0xe4   : > { %408 = vst [vmem:[#allocation2 + $0x20] sm:$0xff] (!%p1297_p3), %v1980_v0  ;;  %409 = vst [vmem:[#allocation2 + $0x28] sm:$0xff] (!%p1297_p3), %v1980_v0 }
  0xe5   : > { %410 = vst [vmem:[#allocation2 + $0x30] sm:$0xff] (!%p1297_p3), %v1980_v0  ;;  %411 = vst [vmem:[#allocation2 + $0x38] sm:$0xff] (!%p1297_p3), %v1980_v0 }
  0xe6   : > { %412 = vst [vmem:[#allocation2 + $0x40] sm:$0xff] (!%p1297_p3), %v1980_v0  ;;  %413 = vst [vmem:[#allocation2 + $0x48] sm:$0xff] (!%p1297_p3), %v1980_v0 }
  0xe7   : > { %414 = vst [vmem:[#allocation2 + $0x50] sm:$0xff] (!%p1297_p3), %v1980_v0  ;;  %415 = vst [vmem:[#allocation2 + $0x58] sm:$0xff] (!%p1297_p3), %v1980_v0 }
  0xe8   : > { %416 = vst [vmem:[#allocation2 + $0x60] sm:$0xff] (!%p1297_p3), %v1980_v0  ;;  %417 = vst [vmem:[#allocation2 + $0x68] sm:$0xff] (!%p1297_p3), %v1980_v0 }
  0xe9   : > { %418 = vst [vmem:[#allocation2 + $0x70] sm:$0xff] %v1980_v0  ;;  %419 = vst [vmem:[#allocation2 + $0x78] sm:$0xff] %v1980_v0 }
  0xea PF: > { %v437_v1 = vld [vmem:[%s2386_s19 + $0x8] sm:$0xff]  ;;  %v439_v2 = vld [vmem:[%s2386_s19 + $0x18] sm:$0xff]  ;;  %v436_v3 = vld [vmem:[%s2386_s19] sm:$0xff]  ;;  %v1981_v8 = vmov 0.0   ;;  %s2802_s17 = sld [smem:[#allocation20_spill]] }
  0xeb   : > { %v1389_v4 = vpack.c.bf16 %v439_v2, %v437_v1  ;;  %v438_v5 = vld [vmem:[%s2386_s19 + $0x10] sm:$0xff]  ;;  %v441_v6 = vld [vmem:[%s2386_s19 + $0x28] sm:$0xff]  ;;  %v443_v7 = vld [vmem:[%s2386_s19 + $0x38] sm:$0xff]  ;;  %544 = vmatprep.mubr.f32.mxu0 %v1981_v8 }
  0xec   : > { %v1391_v9 = vpack.c.bf16 %v438_v5, %v436_v3  ;;  %v1393_v10 = vpack.c.bf16 %v443_v7, %v441_v6  ;;  %v440_v11 = vld [vmem:[%s2386_s19 + $0x20] sm:$0xff]  ;;  %v442_v12 = vld [vmem:[%s2386_s19 + $0x30] sm:$0xff]  ;;  %v445_v13 = vld [vmem:[%s2386_s19 + $0x48] sm:$0xff] }
  0xed   : > { %1390 = vmatprep.subr.bf16.mxu0 %v1389_v4  ;;  %v447_v14 = vld [vmem:[%s2386_s19 + $0x58] sm:$0xff]  ;;  %v1395_v15 = vpack.c.bf16 %v442_v12, %v440_v11  ;;  %v444_v17 = vld [vmem:[%s2386_s19 + $0x40] sm:$0xff]  ;;  %v446_v18 = vld [vmem:[%s2386_s19 + $0x50] sm:$0xff] }
  0xee   : > { %1392 = vmatpush1.bf16.msra.mxu0 %v1391_v9  ;;  %v1397_v16 = vpack.c.bf16 %v447_v14, %v445_v13  ;;  %v449_v19 = vld [vmem:[%s2386_s19 + $0x68] sm:$0xff]  ;;  %v451_v20 = vld [vmem:[%s2386_s19 + $0x78] sm:$0xff]  ;;  %v1399_v21 = vpack.c.bf16 %v446_v18, %v444_v17  ;;  %v448_v23 = vld [vmem:[%s2386_s19 + $0x60] sm:$0xff] }
  0xef   : > { %1394 = vmatprep.subr.bf16.mxu0 %v1393_v10  ;;  %v1401_v22 = vpack.c.bf16 %v451_v20, %v449_v19  ;;  %v450_v24 = vld [vmem:[%s2386_s19 + $0x70] sm:$0xff]  ;;  %v453_v25 = vld [vmem:[%s2386_s19 + $0x88] sm:$0xff]  ;;  %v455_v26 = vld [vmem:[%s2386_s19 + $0x98] sm:$0xff] }
  0xf0   : > { %v1403_v27 = vpack.c.bf16 %v450_v24, %v448_v23  ;;  %v1405_v28 = vpack.c.bf16 %v455_v26, %v453_v25  ;;  %v452_v29 = vld [vmem:[%s2386_s19 + $0x80] sm:$0xff]  ;;  %v454_v30 = vld [vmem:[%s2386_s19 + $0x90] sm:$0xff]  ;;  %v457_v31 = vld [vmem:[%s2386_s19 + $0xa8] sm:$0xff]  ;;  %p1298_p7 = scmp.ne.s32.totalorder %s2802_s17, 1 }
  0xf1   : > { %v459_v32 = vld [vmem:[%s2386_s19 + $0xb8] sm:$0xff]  ;;  %v456_v33 = vld [vmem:[%s2386_s19 + $0xa0] sm:$0xff]  ;;  %v458_v34 = vld [vmem:[%s2386_s19 + $0xb0] sm:$0xff]  ;;  %v1407_v35 = vpack.c.bf16 %v454_v30, %v452_v29 }
  0xf2   : > { %1396 = vmatpush1.bf16.msra.mxu0 %v1395_v15  ;;  %v461_v36 = vld [vmem:[%s2386_s19 + $0xc8] sm:$0xff]  ;;  %v463_v37 = vld [vmem:[%s2386_s19 + $0xd8] sm:$0xff]  ;;  %v1409_v41 = vpack.c.bf16 %v459_v32, %v457_v31  ;;  %v1411_v52 = vpack.c.bf16 %v458_v34, %v456_v33  ;;  %v460_v53 = vld [vmem:[%s2386_s19 + $0xc0] sm:$0xff] }
  0xf3   : > { %1398 = vmatprep.subr.bf16.mxu0 %v1397_v16  ;;  %v833_v38 = vld [vmem:[%s2395_s1 + $0x80] sm:$0xff]  ;;  %v834_v39 = vld [vmem:[%s2395_s1 + $0x88] sm:$0xff]  ;;  %v835_v44 = vld [vmem:[%s2395_s1 + $0x90] sm:$0xff]  ;;  %v1413_v55 = vpack.c.bf16 %v463_v37, %v461_v36 }
  0xf4   : > { %v817_v40 = vld [vmem:[%s2395_s1] sm:$0xff]  ;;  %v1421_v42 = vpack.c.bf16 %v834_v39, %v833_v38  ;;  %v818_v43 = vld [vmem:[%s2395_s1 + $0x8] sm:$0xff]  ;;  %v836_v45 = vld [vmem:[%s2395_s1 + $0x98] sm:$0xff] }
  0xf5   : > { %v1423_v46 = vpack.c.bf16 %v818_v43, %v817_v40  ;;  %v1425_v47 = vpack.c.bf16 %v836_v45, %v835_v44  ;;  %v819_v48 = vld [vmem:[%s2395_s1 + $0x10] sm:$0xff]  ;;  %v820_v49 = vld [vmem:[%s2395_s1 + $0x18] sm:$0xff]  ;;  %v837_v50 = vld [vmem:[%s2395_s1 + $0xa0] sm:$0xff] }
  0xf6   : > { %1400 = vmatpush1.bf16.msra.mxu0 %v1399_v21  ;;  %1422 = vmatprep.subr.bf16.mxu1 %v1421_v42  ;;  %v838_v51 = vld [vmem:[%s2395_s1 + $0xa8] sm:$0xff]  ;;  %v1427_v54 = vpack.c.bf16 %v820_v49, %v819_v48  ;;  %v821_v58 = vld [vmem:[%s2395_s1 + $0x20] sm:$0xff]  ;;  %v467_v61 = vld [vmem:[%s2386_s19 + $0xf8] sm:$0xff] }
  0xf7   : > { %1402 = vmatprep.subr.bf16.mxu0 %v1401_v22  ;;  %1424 = vmatpush3.bf16.msra.mxu1 %v1423_v46  ;;  %v462_v56 = vld [vmem:[%s2386_s19 + $0xd0] sm:$0xff]  ;;  %v1429_v57 = vpack.c.bf16 %v838_v51, %v837_v50  ;;  %v465_v60 = vld [vmem:[%s2386_s19 + $0xe8] sm:$0xff]  ;;  %v464_v1 = vld [vmem:[%s2386_s19 + $0xe0] sm:$0xff]  ;;  %v470_v50 = vlaneseq }
  0xf8   : > { %1426 = vmatprep.subr.bf16.mxu1 %v1425_v47  ;;  %v822_v59 = vld [vmem:[%s2395_s1 + $0x28] sm:$0xff]  ;;  %v1415_v62 = vpack.c.bf16 %v462_v56, %v460_v53  ;;  %v1417_v0 = vpack.c.bf16 %v467_v61, %v465_v60  ;;  %v420_v4 = vld [vmem:[%s2378_s5] sm:$0xff]  ;;  %v423_v7 = vld [vmem:[%s2378_s5 + $0x18] sm:$0xff] }
  0xf9   : > { %v1431_v63 = vpack.c.bf16 %v822_v59, %v821_v58  ;;  %v466_v2 = vld [vmem:[%s2386_s19 + $0xf0] sm:$0xff]  ;;  %v421_v5 = vld [vmem:[%s2378_s5 + $0x8] sm:$0xff]  ;;  %v424_v9 = vld [vmem:[%s2378_s5 + $0x20] sm:$0xff]  ;;  %v471_v51 = vshrl.u32 %v470_v50, 7 }
  0xfa   : > { %1404 = vmatpush1.bf16.msra.mxu0 %v1403_v27  ;;  %v1419_v3 = vpack.c.bf16 %v466_v2, %v464_v1  ;;  %v422_v6 = vld [vmem:[%s2378_s5 + $0x10] sm:$0xff]  ;;  %v425_v10 = vld [vmem:[%s2378_s5 + $0x28] sm:$0xff]  ;;  %v427_v12 = vld [vmem:[%s2378_s5 + $0x38] sm:$0xff] }
  0xfb   : > { %1406 = vmatprep.subr.bf16.mxu0 %v1405_v28  ;;  %1428 = vmatpush3.bf16.msra.mxu1 %v1427_v54  ;;  %v426_v11 = vld [vmem:[%s2378_s5 + $0x30] sm:$0xff]  ;;  %v428_v13 = vld [vmem:[%s2378_s5 + $0x40] sm:$0xff]  ;;  %v429_v14 = vld [vmem:[%s2378_s5 + $0x48] sm:$0xff]  ;;  %v476_v54 = vsub.s32 1, %v471_v51 }
  0xfc   : > { %1430 = vmatprep.subr.bf16.mxu1 %v1429_v57  ;;  %v430_v15 = vld [vmem:[%s2378_s5 + $0x50] sm:$0xff]  ;;  %v431_v16 = vld [vmem:[%s2378_s5 + $0x58] sm:$0xff]  ;;  %v432_v17 = vld [vmem:[%s2378_s5 + $0x60] sm:$0xff] }
  0xfd   : > { %v433_v18 = vld [vmem:[%s2378_s5 + $0x68] sm:$0xff]  ;;  %v434_v19 = vld [vmem:[%s2378_s5 + $0x70] sm:$0xff]  ;;  %v435_v20 = vld [vmem:[%s2378_s5 + $0x78] sm:$0xff] }
  0xfe   : > { %1408 = vmatpush1.bf16.msra.mxu0 %v1407_v35  ;;  %v839_v21 = vld [vmem:[%s2395_s1 + $0xb0] sm:$0xff]  ;;  %v840_v22 = vld [vmem:[%s2395_s1 + $0xb8] sm:$0xff]  ;;  %v841_v27 = vld [vmem:[%s2395_s1 + $0xc0] sm:$0xff] }
  0xff   : > { %1410 = vmatprep.subr.bf16.mxu0 %v1409_v41  ;;  %1432 = vmatpush3.bf16.msra.mxu1 %v1431_v63  ;;  %v1433_v23 = vpack.c.bf16 %v840_v22, %v839_v21  ;;  %v823_v24 = vld [vmem:[%s2395_s1 + $0x30] sm:$0xff]  ;;  %v824_v25 = vld [vmem:[%s2395_s1 + $0x38] sm:$0xff]  ;;  %v842_v28 = vld [vmem:[%s2395_s1 + $0xc8] sm:$0xff] }
 0x100   : > { %v1435_v26 = vpack.c.bf16 %v824_v25, %v823_v24  ;;  %v1437_v29 = vpack.c.bf16 %v842_v28, %v841_v27  ;;  %v826_v30 = vld [vmem:[%s2395_s1 + $0x48] sm:$0xff]  ;;  %v843_v32 = vld [vmem:[%s2395_s1 + $0xd0] sm:$0xff]  ;;  %v844_v33 = vld [vmem:[%s2395_s1 + $0xd8] sm:$0xff] }
 0x101   : > { %1434 = vmatprep.subr.bf16.mxu1 %v1433_v23  ;;  %v1441_v34 = vpack.c.bf16 %v844_v33, %v843_v32  ;;  %v827_v35 = vld [vmem:[%s2395_s1 + $0x50] sm:$0xff]  ;;  %v828_v36 = vld [vmem:[%s2395_s1 + $0x58] sm:$0xff]  ;;  %v845_v38 = vld [vmem:[%s2395_s1 + $0xe0] sm:$0xff] }
 0x102   : > { %1412 = vmatpush1.bf16.msra.mxu0 %v1411_v52  ;;  %v1443_v37 = vpack.c.bf16 %v828_v36, %v827_v35  ;;  %v846_v39 = vld [vmem:[%s2395_s1 + $0xe8] sm:$0xff]  ;;  %v829_v41 = vld [vmem:[%s2395_s1 + $0x60] sm:$0xff]  ;;  %v847_v44 = vld [vmem:[%s2395_s1 + $0xf0] sm:$0xff]  ;;  %v472_v52 = vsub.s32 0, %v471_v51 }
 0x103   : > { %1414 = vmatprep.subr.bf16.mxu0 %v1413_v55  ;;  %1436 = vmatpush3.bf16.msra.mxu1 %v1435_v26  ;;  %v1445_v40 = vpack.c.bf16 %v846_v39, %v845_v38  ;;  %v830_v42 = vld [vmem:[%s2395_s1 + $0x68] sm:$0xff]  ;;  %v848_v45 = vld [vmem:[%s2395_s1 + $0xf8] sm:$0xff]  ;;  %v831_v47 = vld [vmem:[%s2395_s1 + $0x70] sm:$0xff] }
 0x104   : > { %1438 = vmatprep.subr.bf16.mxu1 %v1437_v29  ;;  %v1447_v43 = vpack.c.bf16 %v830_v42, %v829_v41  ;;  %v1449_v46 = vpack.c.bf16 %v848_v45, %v847_v44  ;;  %v832_v48 = vld [vmem:[%s2395_s1 + $0x78] sm:$0xff] }
 0x105   : > { %v1451_v49 = vpack.c.bf16 %v832_v48, %v831_v47  ;;  %v468_v53 = vld [vmem:[%s340_s14] sm:$0x3] }
 0x106   : > { %1416 = vmatpush1.bf16.msra.mxu0 %v1415_v62  ;;  %v2506_v55 = vrot.slane %v468_v53, %v472_v52  ;;  %v2508_v56 = vrot.slane %v468_v53, %v476_v54 }
 0x107   : > { %1418 = vmatprep.subr.bf16.mxu0 %v1417_v0 }
 0x10a   : > { %1420 = vmatpush1.bf16.msra.mxu0 %v1419_v3 }
 0x10d   : > { %545 = vmatmul.mubr.f32.vlgmr.msra.gmra.mrb[0].mxu0 %v420_v4 }
 0x10e   : > { %550 = vmatprep.mubr.f32.mxu0 %v1981_v8 }
 0x111   : > { %551 = vmatmul.mubr.f32.gmra.mrb[2].mxu0 %v421_v5 }
 0x112   : > { %556 = vmatprep.mubr.f32.mxu0 %v1981_v8 }
 0x115   : > { %557 = vmatmul.mubr.f32.gmra.mrb[4].mxu0 %v422_v6 }
 0x116   : > { %562 = vmatprep.mubr.f32.mxu0 %v1981_v8 }
 0x119   : > { %563 = vmatmul.mubr.f32.gmra.mrb[6].mxu0 %v423_v7 }
 0x11a   : > { %568 = vmatprep.mubr.f32.mxu0 %v1981_v8 }
 0x11d   : > { %569 = vmatmul.mubr.f32.gmra.mrb[8].mxu0 %v424_v9 }
 0x11e   : > { %574 = vmatprep.mubr.f32.mxu0 %v1981_v8 }
 0x121   : > { %575 = vmatmul.mubr.f32.gmra.mrb[10].mxu0 %v425_v10 }
 0x122   : > { %580 = vmatprep.mubr.f32.mxu0 %v1981_v8 }
 0x125   : > { %581 = vmatmul.mubr.f32.gmra.mrb[12].mxu0 %v426_v11 }
 0x126   : > { %586 = vmatprep.mubr.f32.mxu0 %v1981_v8 }
 0x129   : > { %587 = vmatmul.mubr.f32.gmra.mrb[14].mxu0 %v427_v12 }
 0x12a   : > { %592 = vmatprep.mubr.f32.mxu0 %v1981_v8 }
 0x12d   : > { %593 = vmatmul.mubr.f32.gmra.mrb[16].mxu0 %v428_v13 }
 0x12e   : > { %598 = vmatprep.mubr.f32.mxu0 %v1981_v8 }
 0x131   : > { %599 = vmatmul.mubr.f32.gmra.mrb[18].mxu0 %v429_v14 }
 0x132   : > { %604 = vmatprep.mubr.f32.mxu0 %v1981_v8 }
 0x135   : > { %605 = vmatmul.mubr.f32.gmra.mrb[20].mxu0 %v430_v15 }
 0x136   : > { %610 = vmatprep.mubr.f32.mxu0 %v1981_v8 }
 0x139   : > { %611 = vmatmul.mubr.f32.gmra.mrb[22].mxu0 %v431_v16 }
 0x13a   : > { %616 = vmatprep.mubr.f32.mxu0 %v1981_v8 }
 0x13d   : > { %617 = vmatmul.mubr.f32.gmra.mrb[24].mxu0 %v432_v17 }
 0x13e   : > { %622 = vmatprep.mubr.f32.mxu0 %v1981_v8 }
 0x141   : > { %623 = vmatmul.mubr.f32.gmra.mrb[26].mxu0 %v433_v18 }
 0x142   : > { %628 = vmatprep.mubr.f32.mxu0 %v1981_v8 }
 0x145   : > { %629 = vmatmul.mubr.f32.gmra.mrb[28].mxu0 %v434_v19 }
 0x146   : > { %634 = vmatprep.mubr.f32.mxu0 %v1981_v8  ;;  %v825_v8 = vld [vmem:[%s2395_s1 + $0x40] sm:$0xff] }
 0x147   : > { %v1439_v31 = vpack.c.bf16 %v826_v30, %v825_v8 }
 0x149   : > { %635 = vmatmul.mubr.f32.gmra.mrb[30].mxu0 %v435_v20  ;;  %1440 = vmatpush3.bf16.msra.mxu1 %v1439_v31 }
 0x14a   : > { %1442 = vmatprep.subr.bf16.mxu1 %v1441_v34 }
 0x14d   : > { %1444 = vmatpush3.bf16.msra.mxu1 %v1443_v37 }
 0x14e   : > { %1446 = vmatprep.subr.bf16.mxu1 %v1445_v40 }
 0x151   : > { %1448 = vmatpush3.bf16.msra.mxu1 %v1447_v43 }
 0x152   : > { %1450 = vmatprep.subr.bf16.mxu1 %v1449_v46 }
 0x155   : > { %1452 = vmatpush3.bf16.msra.mxu1 %v1451_v49 }
 0x1e0   : > { %v546_v57 = vpop.f32.mrb[0].mxu0 }
 0x1e1   : > { %v547_v58 = vadd.f32 %v546_v57, %v2506_v55  ;;  %v548_v59 = vpop.f32.mrb[1].mxu0 }
 0x1e2   : > { %v549_v60 = vadd.f32 %v548_v59, %v2508_v56 }
 0x1e3   : > { %v673_v61 = vmul.f32 0.70710677, %v547_v58  ;;  %v641_v26 = vmul.f32 0.5, %v547_v58 }
 0x1e4   : > { %v674_v62 = vmul.f32 0.70710677, %v549_v60  ;;  %v552_v63 = vpop.f32.mrb[2].mxu0  ;;  %v642_v24 = vmul.f32 0.5, %v549_v60 }
 0x1e5   : > { %1606 = verf.f32 %v673_v61  ;;  %v553_v0 = vadd.f32 %v552_v63, %v2506_v55  ;;  %v554_v1 = vpop.f32.mrb[3].mxu0 }
 0x1e6   : > { %1608 = verf.f32 %v674_v62  ;;  %v555_v2 = vadd.f32 %v554_v1, %v2508_v56 }
 0x1e7   : > { %v675_v3 = vmul.f32 0.70710677, %v553_v0  ;;  %v643_v39 = vmul.f32 0.5, %v553_v0 }
 0x1e8   : > { %v676_v4 = vmul.f32 0.70710677, %v555_v2  ;;  %v558_v5 = vpop.f32.mrb[4].mxu0  ;;  %v644_v35 = vmul.f32 0.5, %v555_v2 }
 0x1e9   : > { %1610 = verf.f32 %v675_v3  ;;  %v559_v6 = vadd.f32 %v558_v5, %v2506_v55  ;;  %v560_v7 = vpop.f32.mrb[5].mxu0 }
 0x1ea   : > { %1612 = verf.f32 %v676_v4  ;;  %v561_v9 = vadd.f32 %v560_v7, %v2508_v56 }
 0x1eb   : > { %v677_v10 = vmul.f32 0.70710677, %v559_v6  ;;  %v645_v53 = vmul.f32 0.5, %v559_v6 }
 0x1ec   : > { %v678_v11 = vmul.f32 0.70710677, %v561_v9  ;;  %v564_v12 = vpop.f32.mrb[6].mxu0  ;;  %v646_v49 = vmul.f32 0.5, %v561_v9 }
 0x1ed   : > { %1614 = verf.f32 %v677_v10  ;;  %v2517_v13 = vadd.f32 %v564_v12, %v2506_v55  ;;  %v566_v14 = vpop.f32.mrb[7].mxu0 }
 0x1ee   : > { %1616 = verf.f32 %v678_v11  ;;  %v567_v15 = vadd.f32 %v566_v14, %v2508_v56 }
 0x1ef   : > { %v1607_v16 = vpop.eup %1606  ;;  %v679_v17 = vmul.f32 0.70710677, %v2517_v13  ;;  %v647_v5 = vmul.f32 0.5, %v2517_v13 }
 0x1f0   : > { %v1609_v18 = vpop.eup %1608  ;;  %v737_v19 = vadd.f32 1.0, %v1607_v16  ;;  %v680_v20 = vmul.f32 0.70710677, %v567_v15  ;;  %v570_v21 = vpop.f32.mrb[8].mxu0  ;;  %v648_v1 = vmul.f32 0.5, %v567_v15 }
 0x1f1   : > { %1618 = verf.f32 %v679_v17  ;;  %v2522_v22 = vadd.f32 %v570_v21, %v2506_v55  ;;  %v572_v23 = vpop.f32.mrb[9].mxu0  ;;  %v738_v25 = vadd.f32 1.0, %v1609_v18 }
 0x1f2   : > { %1620 = verf.f32 %v680_v20  ;;  %v2525_v27 = vadd.f32 %v572_v23, %v2508_v56  ;;  %v769_v34 = vmul.f32 %v737_v19, %v641_v26 }
 0x1f3   : > { %v1611_v28 = vpop.eup %1610  ;;  %v681_v29 = vmul.f32 0.70710677, %v2522_v22  ;;  %v770_v8 = vmul.f32 %v738_v25, %v642_v24  ;;  %v649_v20 = vmul.f32 0.5, %v2522_v22 }
 0x1f4   : > { %v1613_v30 = vpop.eup %1612  ;;  %v739_v31 = vadd.f32 1.0, %v1611_v28  ;;  %v682_v32 = vmul.f32 0.70710677, %v2525_v27  ;;  %v576_v33 = vpop.f32.mrb[10].mxu0  ;;  %v650_v17 = vmul.f32 0.5, %v2525_v27 }
 0x1f5   : > { %v740_v36 = vadd.f32 1.0, %v1613_v30  ;;  %1622 = verf.f32 %v681_v29  ;;  %v2530_v37 = vadd.f32 %v576_v33, %v2506_v55  ;;  %v578_v38 = vpop.f32.mrb[11].mxu0  ;;  %913 = vmatprep.mubr.f32.mxu1 %v770_v8 }
 0x1f6   : > { %1624 = verf.f32 %v682_v32  ;;  %v2533_v40 = vadd.f32 %v578_v38, %v2508_v56  ;;  %914 = vmatmul.mubr.f32.vlgmr.msra.gmra.mrb[0].mxu1 %v769_v34  ;;  %v771_v48 = vmul.f32 %v739_v31, %v643_v39 }
 0x1f7   : > { %v1615_v41 = vpop.eup %1614  ;;  %v683_v42 = vmul.f32 0.70710677, %v2530_v37  ;;  %v772_v43 = vmul.f32 %v740_v36, %v644_v35  ;;  %v651_v33 = vmul.f32 0.5, %v2530_v37 }
 0x1f8   : > { %v1617_v44 = vpop.eup %1616  ;;  %v741_v45 = vadd.f32 1.0, %v1615_v41  ;;  %v684_v46 = vmul.f32 0.70710677, %v2533_v40  ;;  %v582_v47 = vpop.f32.mrb[12].mxu0  ;;  %v652_v30 = vmul.f32 0.5, %v2533_v40 }
 0x1f9   : > { %v742_v50 = vadd.f32 1.0, %v1617_v44  ;;  %1626 = verf.f32 %v683_v42  ;;  %v2538_v51 = vadd.f32 %v582_v47, %v2506_v55  ;;  %v584_v52 = vpop.f32.mrb[13].mxu0  ;;  %918 = vmatprep.mubr.f32.mxu1 %v772_v43 }
 0x1fa   : > { %1628 = verf.f32 %v684_v46  ;;  %v2541_v54 = vadd.f32 %v584_v52, %v2508_v56  ;;  %919 = vmatmul.mubr.f32.gmra.mrb[2].mxu1 %v771_v48  ;;  %v773_v0 = vmul.f32 %v741_v45, %v645_v53 }
 0x1fb   : > { %v1619_v57 = vpop.eup %1618  ;;  %v685_v58 = vmul.f32 0.70710677, %v2538_v51  ;;  %v774_v59 = vmul.f32 %v742_v50, %v646_v49  ;;  %v653_v47 = vmul.f32 0.5, %v2538_v51 }
 0x1fc   : > { %v1621_v60 = vpop.eup %1620  ;;  %v743_v61 = vadd.f32 1.0, %v1619_v57  ;;  %v686_v62 = vmul.f32 0.70710677, %v2541_v54  ;;  %v588_v63 = vpop.f32.mrb[14].mxu0  ;;  %v654_v44 = vmul.f32 0.5, %v2541_v54 }
 0x1fd   : > { %v744_v2 = vadd.f32 1.0, %v1621_v60  ;;  %1630 = verf.f32 %v685_v58  ;;  %v2546_v3 = vadd.f32 %v588_v63, %v2506_v55  ;;  %v590_v4 = vpop.f32.mrb[15].mxu0  ;;  %923 = vmatprep.mubr.f32.mxu1 %v774_v59 }
 0x1fe   : > { %1632 = verf.f32 %v686_v62  ;;  %v2550_v6 = vadd.f32 %v590_v4, %v2508_v56  ;;  %924 = vmatmul.mubr.f32.gmra.mrb[4].mxu1 %v773_v0  ;;  %v775_v16 = vmul.f32 %v743_v61, %v647_v5 }
 0x1ff   : > { %v1623_v7 = vpop.eup %1622  ;;  %v687_v9 = vmul.f32 0.70710677, %v2546_v3  ;;  %v776_v10 = vmul.f32 %v744_v2, %v648_v1  ;;  %v655_v63 = vmul.f32 0.5, %v2546_v3 }
 0x200   : > { %v1625_v11 = vpop.eup %1624  ;;  %v745_v12 = vadd.f32 1.0, %v1623_v7  ;;  %v688_v14 = vmul.f32 0.70710677, %v2550_v6  ;;  %v594_v15 = vpop.f32.mrb[16].mxu0  ;;  %v656_v60 = vmul.f32 0.5, %v2550_v6 }
 0x201   : > { %v746_v18 = vadd.f32 1.0, %v1625_v11  ;;  %1634 = verf.f32 %v687_v9  ;;  %v2556_v13 = vadd.f32 %v594_v15, %v2506_v55  ;;  %v596_v19 = vpop.f32.mrb[17].mxu0  ;;  %928 = vmatprep.mubr.f32.mxu1 %v776_v10 }
 0x202   : > { %1636 = verf.f32 %v688_v14  ;;  %v2560_v21 = vadd.f32 %v596_v19, %v2508_v56  ;;  %929 = vmatmul.mubr.f32.gmra.mrb[6].mxu1 %v775_v16  ;;  %v777_v8 = vmul.f32 %v745_v12, %v649_v20 }
 0x203   : > { %v1627_v23 = vpop.eup %1626  ;;  %v689_v24 = vmul.f32 0.70710677, %v2556_v13  ;;  %v778_v25 = vmul.f32 %v746_v18, %v650_v17  ;;  %v657_v15 = vmul.f32 0.5, %v2556_v13 }
 0x204   : > { %v1629_v26 = vpop.eup %1628  ;;  %v747_v27 = vadd.f32 1.0, %v1627_v23  ;;  %v690_v28 = vmul.f32 0.70710677, %v2560_v21  ;;  %v600_v29 = vpop.f32.mrb[18].mxu0  ;;  %v658_v11 = vmul.f32 0.5, %v2560_v21 }
 0x205   : > { %v748_v31 = vadd.f32 1.0, %v1629_v26  ;;  %1638 = verf.f32 %v689_v24  ;;  %v2566_v22 = vadd.f32 %v600_v29, %v2506_v55  ;;  %v602_v32 = vpop.f32.mrb[19].mxu0  ;;  %933 = vmatprep.mubr.f32.mxu1 %v778_v25 }
 0x206   : > { %1640 = verf.f32 %v690_v28  ;;  %v2570_v34 = vadd.f32 %v602_v32, %v2508_v56  ;;  %934 = vmatmul.mubr.f32.gmra.mrb[8].mxu1 %v777_v8  ;;  %v779_v43 = vmul.f32 %v747_v27, %v651_v33 }
 0x207   : > { %v1631_v35 = vpop.eup %1630  ;;  %v691_v36 = vmul.f32 0.70710677, %v2566_v22  ;;  %v780_v38 = vmul.f32 %v748_v31, %v652_v30  ;;  %v659_v29 = vmul.f32 0.5, %v2566_v22 }
 0x208   : > { %v1633_v39 = vpop.eup %1632  ;;  %v749_v40 = vadd.f32 1.0, %v1631_v35  ;;  %v692_v41 = vmul.f32 0.70710677, %v2570_v34  ;;  %v606_v42 = vpop.f32.mrb[20].mxu0  ;;  %v660_v26 = vmul.f32 0.5, %v2570_v34 }
 0x209   : > { %v750_v45 = vadd.f32 1.0, %v1633_v39  ;;  %1642 = verf.f32 %v691_v36  ;;  %v2576_v37 = vadd.f32 %v606_v42, %v2506_v55  ;;  %v608_v46 = vpop.f32.mrb[21].mxu0  ;;  %938 = vmatprep.mubr.f32.mxu1 %v780_v38 }
 0x20a   : > { %1644 = verf.f32 %v692_v41  ;;  %v2580_v48 = vadd.f32 %v608_v46, %v2508_v56  ;;  %939 = vmatmul.mubr.f32.gmra.mrb[10].mxu1 %v779_v43  ;;  %v781_v59 = vmul.f32 %v749_v40, %v653_v47 }
 0x20b   : > { %v1635_v49 = vpop.eup %1634  ;;  %v693_v50 = vmul.f32 0.70710677, %v2576_v37  ;;  %v782_v52 = vmul.f32 %v750_v45, %v654_v44  ;;  %v661_v42 = vmul.f32 0.5, %v2576_v37 }
 0x20c   : > { %v1637_v53 = vpop.eup %1636  ;;  %v751_v54 = vadd.f32 1.0, %v1635_v49  ;;  %v694_v57 = vmul.f32 0.70710677, %v2580_v48  ;;  %v612_v58 = vpop.f32.mrb[22].mxu0  ;;  %v662_v39 = vmul.f32 0.5, %v2580_v48 }
 0x20d   : > { %v752_v61 = vadd.f32 1.0, %v1637_v53  ;;  %1646 = verf.f32 %v693_v50  ;;  %v2586_v51 = vadd.f32 %v612_v58, %v2506_v55  ;;  %v614_v62 = vpop.f32.mrb[23].mxu0  ;;  %943 = vmatprep.mubr.f32.mxu1 %v782_v52 }
 0x20e   : > { %1648 = verf.f32 %v694_v57  ;;  %v2590_v0 = vadd.f32 %v614_v62, %v2508_v56  ;;  %944 = vmatmul.mubr.f32.gmra.mrb[12].mxu1 %v781_v59  ;;  %v783_v10 = vmul.f32 %v751_v54, %v655_v63 }
 0x20f   : > { %v1639_v1 = vpop.eup %1638  ;;  %v695_v2 = vmul.f32 0.70710677, %v2586_v51  ;;  %v784_v4 = vmul.f32 %v752_v61, %v656_v60  ;;  %v663_v37 = vmul.f32 0.5, %v2586_v51 }
 0x210   : > { %v1641_v5 = vpop.eup %1640  ;;  %v753_v6 = vadd.f32 1.0, %v1639_v1  ;;  %v696_v7 = vmul.f32 0.70710677, %v2590_v0  ;;  %v618_v9 = vpop.f32.mrb[24].mxu0  ;;  %v664_v53 = vmul.f32 0.5, %v2590_v0 }
 0x211   : > { %v754_v12 = vadd.f32 1.0, %v1641_v5  ;;  %1650 = verf.f32 %v695_v2  ;;  %v2596_v3 = vadd.f32 %v618_v9, %v2506_v55  ;;  %v620_v14 = vpop.f32.mrb[25].mxu0  ;;  %948 = vmatprep.mubr.f32.mxu1 %v784_v4 }
 0x212   : > { %1652 = verf.f32 %v696_v7  ;;  %v2600_v16 = vadd.f32 %v620_v14, %v2508_v56  ;;  %949 = vmatmul.mubr.f32.gmra.mrb[14].mxu1 %v783_v10  ;;  %v785_v25 = vmul.f32 %v753_v6, %v657_v15 }
 0x213   : > { %v1643_v17 = vpop.eup %1642  ;;  %v697_v18 = vmul.f32 0.70710677, %v2596_v3  ;;  %v786_v19 = vmul.f32 %v754_v12, %v658_v11 }
 0x214   : > { %v1645_v20 = vpop.eup %1644  ;;  %v755_v21 = vadd.f32 1.0, %v1643_v17  ;;  %v698_v23 = vmul.f32 0.70710677, %v2600_v16  ;;  %v624_v24 = vpop.f32.mrb[26].mxu0  ;;  %v666_v0 = vmul.f32 0.5, %v2600_v16 }
 0x215   : > { %v756_v27 = vadd.f32 1.0, %v1645_v20  ;;  %1654 = verf.f32 %v697_v18  ;;  %v2606_v13 = vadd.f32 %v624_v24, %v2506_v55  ;;  %v626_v28 = vpop.f32.mrb[27].mxu0  ;;  %953 = vmatprep.mubr.f32.mxu1 %v786_v19 }
 0x216   : > { %1656 = verf.f32 %v698_v23  ;;  %v627_v8 = vadd.f32 %v626_v28, %v2508_v56  ;;  %954 = vmatmul.mubr.f32.gmra.mrb[16].mxu1 %v785_v25  ;;  %v787_v38 = vmul.f32 %v755_v21, %v659_v29 }
 0x217   : > { %v1647_v30 = vpop.eup %1646  ;;  %v699_v31 = vmul.f32 0.70710677, %v2606_v13  ;;  %v788_v32 = vmul.f32 %v756_v27, %v660_v26  ;;  %v667_v12 = vmul.f32 0.5, %v2606_v13 }
 0x218   : > { %v1649_v33 = vpop.eup %1648  ;;  %v757_v35 = vadd.f32 1.0, %v1647_v30  ;;  %v700_v34 = vmul.f32 0.70710677, %v627_v8  ;;  %v630_v36 = vpop.f32.mrb[28].mxu0  ;;  %v668_v10 = vmul.f32 0.5, %v627_v8 }
 0x219   : > { %v758_v40 = vadd.f32 1.0, %v1649_v33  ;;  %1658 = verf.f32 %v699_v31  ;;  %v631_v41 = vadd.f32 %v630_v36, %v2506_v55  ;;  %v632_v22 = vpop.f32.mrb[29].mxu0  ;;  %958 = vmatprep.mubr.f32.mxu1 %v788_v32  ;;  %v801_v31 = vld [vmem:[#allocation2] sm:$0xff]  ;;  %v802_v36 = vld [vmem:[#allocation2 + $0x8] sm:$0xff] }
 0x21a   : > { %1660 = verf.f32 %v700_v34  ;;  %v633_v43 = vadd.f32 %v632_v22, %v2508_v56  ;;  %959 = vmatmul.mubr.f32.gmra.mrb[18].mxu1 %v787_v38  ;;  %v789_v48 = vmul.f32 %v757_v35, %v661_v42  ;;  %v803_v22 = vld [vmem:[#allocation2 + $0x10] sm:$0xff] }
 0x21b   : > { %v1651_v44 = vpop.eup %1650  ;;  %v701_v45 = vmul.f32 0.70710677, %v631_v41  ;;  %v790_v46 = vmul.f32 %v758_v40, %v662_v39  ;;  %v669_v20 = vmul.f32 0.5, %v631_v41 }
 0x21c   : > { %v1653_v47 = vpop.eup %1652  ;;  %v759_v49 = vadd.f32 1.0, %v1651_v44  ;;  %v702_v50 = vmul.f32 0.70710677, %v633_v43  ;;  %v636_v52 = vpop.f32.mrb[30].mxu0  ;;  %v670_v19 = vmul.f32 0.5, %v633_v43 }
 0x21d   : > { %v760_v54 = vadd.f32 1.0, %v1653_v47  ;;  %1662 = verf.f32 %v701_v45  ;;  %v637_v57 = vadd.f32 %v636_v52, %v2506_v55  ;;  %v638_v58 = vpop.f32.mrb[31].mxu0  ;;  %963 = vmatprep.mubr.f32.mxu1 %v790_v46  ;;  %v665_v55 = vmul.f32 0.5, %v2596_v3  ;;  %v804_v46 = vld [vmem:[#allocation2 + $0x18] sm:$0xff] }
 0x21e   : > { %1664 = verf.f32 %v702_v50  ;;  %v639_v59 = vadd.f32 %v638_v58, %v2508_v56  ;;  %964 = vmatmul.mubr.f32.gmra.mrb[20].mxu1 %v789_v48  ;;  %v791_v4 = vmul.f32 %v759_v49, %v663_v37  ;;  %v805_v48 = vld [vmem:[#allocation2 + $0x20] sm:$0xff]  ;;  %v806_v37 = vld [vmem:[#allocation2 + $0x28] sm:$0xff] }
 0x21f   : > { %v1655_v60 = vpop.eup %1654  ;;  %v703_v61 = vmul.f32 0.70710677, %v637_v57  ;;  %v792_v62 = vmul.f32 %v760_v54, %v664_v53  ;;  %v671_v13 = vmul.f32 0.5, %v637_v57 }
 0x220   : > { %v1657_v63 = vpop.eup %1656  ;;  %v761_v1 = vadd.f32 1.0, %v1655_v60  ;;  %v704_v2 = vmul.f32 0.70710677, %v639_v59  ;;  %v672_v27 = vmul.f32 0.5, %v639_v59 }
 0x221   : > { %v762_v5 = vadd.f32 1.0, %v1657_v63  ;;  %1666 = verf.f32 %v703_v61  ;;  %968 = vmatprep.mubr.f32.mxu1 %v792_v62  ;;  %v807_v63 = vld [vmem:[#allocation2 + $0x30] sm:$0xff] }
 0x222   : > { %1668 = verf.f32 %v704_v2  ;;  %969 = vmatmul.mubr.f32.gmra.mrb[22].mxu1 %v791_v4  ;;  %v793_v9 = vmul.f32 %v761_v1, %v665_v55 }
 0x223   : > { %v1659_v51 = vpop.eup %1658  ;;  %v794_v6 = vmul.f32 %v762_v5, %v666_v0  ;;  %v808_v5 = vld [vmem:[#allocation2 + $0x38] sm:$0xff] }
 0x224   : > { %v1661_v56 = vpop.eup %1660  ;;  %v763_v7 = vadd.f32 1.0, %v1659_v51 }
 0x225   : > { %v764_v11 = vadd.f32 1.0, %v1661_v56  ;;  %973 = vmatprep.mubr.f32.mxu1 %v794_v6 }
 0x226   : > { %974 = vmatmul.mubr.f32.gmra.mrb[24].mxu1 %v793_v9  ;;  %v795_v18 = vmul.f32 %v763_v7, %v667_v12  ;;  %v809_v7 = vld [vmem:[#allocation2 + $0x40] sm:$0xff] }
 0x227   : > { %v1663_v14 = vpop.eup %1662  ;;  %v796_v15 = vmul.f32 %v764_v11, %v668_v10 }
 0x228   : > { %v1665_v16 = vpop.eup %1664  ;;  %v765_v17 = vadd.f32 1.0, %v1663_v14  ;;  %v810_v14 = vld [vmem:[#allocation2 + $0x48] sm:$0xff] }
 0x229   : > { %v766_v3 = vadd.f32 1.0, %v1665_v16  ;;  %978 = vmatprep.mubr.f32.mxu1 %v796_v15 }
 0x22a   : > { %979 = vmatmul.mubr.f32.gmra.mrb[26].mxu1 %v795_v18  ;;  %v797_v26 = vmul.f32 %v765_v17, %v669_v20 }
 0x22b   : > { %v1667_v21 = vpop.eup %1666  ;;  %v798_v23 = vmul.f32 %v766_v3, %v670_v19  ;;  %v811_v19 = vld [vmem:[#allocation2 + $0x50] sm:$0xff] }
 0x22c   : > { %v1669_v24 = vpop.eup %1668  ;;  %v767_v25 = vadd.f32 1.0, %v1667_v21 }
 0x22d   : > { %v768_v28 = vadd.f32 1.0, %v1669_v24  ;;  %983 = vmatprep.mubr.f32.mxu1 %v798_v23  ;;  %v812_v24 = vld [vmem:[#allocation2 + $0x58] sm:$0xff] }
 0x22e   : > { %984 = vmatmul.mubr.f32.gmra.mrb[28].mxu1 %v797_v26  ;;  %v799_v8 = vmul.f32 %v767_v25, %v671_v13  ;;  %v813_v13 = vld [vmem:[#allocation2 + $0x60] sm:$0xff] }
 0x22f   : > { %v800_v29 = vmul.f32 %v768_v28, %v672_v27 }
 0x231   : > { %988 = vmatprep.mubr.f32.mxu1 %v800_v29 }
 0x232   : > { %989 = vmatmul.mubr.f32.gmra.mrb[30].mxu1 %v799_v8 }
 0x2c9   : > { %v1341_v30 = vpop.f32.mrb[0].mxu1 }
 0x2ca   : > { %v1342_v32 = vpop.f32.mrb[1].mxu1 }
 0x2cb   : > { %v1343_v33 = vadd.f32 %v1342_v32, %v1341_v30  ;;  %v814_v32 = vld [vmem:[#allocation2 + $0x68] sm:$0xff] }
 0x2cd   : > { %v994_v35 = vadd.f32 %v1343_v33, %v801_v31  ;;  %v1344_v34 = vpop.f32.mrb[2].mxu1 }
 0x2ce   : > { %v1345_v38 = vpop.f32.mrb[3].mxu1 }
 0x2cf   : > { %1010 = vst [vmem:[#allocation2] sm:$0xff] %v994_v35  ;;  %v1346_v39 = vadd.f32 %v1345_v38, %v1344_v34  ;;  %v815_v38 = vld [vmem:[#allocation2 + $0x70] sm:$0xff] }
 0x2d1   : > { %v995_v40 = vadd.f32 %v1346_v39, %v802_v36  ;;  %v1347_v41 = vpop.f32.mrb[4].mxu1 }
 0x2d2   : > { %v1348_v42 = vpop.f32.mrb[5].mxu1 }
 0x2d3   : > { %1011 = vst [vmem:[#allocation2 + $0x8] sm:$0xff] %v995_v40  ;;  %v1349_v43 = vadd.f32 %v1348_v42, %v1347_v41  ;;  %v816_v42 = vld [vmem:[#allocation2 + $0x78] sm:$0xff] }
 0x2d5   : > { %v996_v44 = vadd.f32 %v1349_v43, %v803_v22  ;;  %v1350_v45 = vpop.f32.mrb[6].mxu1 }
 0x2d6   : > { %v1351_v47 = vpop.f32.mrb[7].mxu1 }
 0x2d7   : > { %1012 = vst [vmem:[#allocation2 + $0x10] sm:$0xff] %v996_v44  ;;  %v1352_v49 = vadd.f32 %v1351_v47, %v1350_v45  ;;  %v1299_v47 = vld [vmem:[#allocation11] ss:$0 sm:$0xff] (!%p1298_p7) }
 0x2d9   : > { %v997_v50 = vadd.f32 %v1352_v49, %v804_v46  ;;  %v1353_v52 = vpop.f32.mrb[8].mxu1  ;;  %v1030_v46 = vld [vmem:[#allocation2] sm:$0xff] (!%p1298_p7) }
 0x2da   : > { %v1354_v53 = vpop.f32.mrb[9].mxu1  ;;  %v1031_v49 = vld [vmem:[#allocation2 + $0x8] sm:$0xff] (!%p1298_p7) }
 0x2db   : > { %1013 = vst [vmem:[#allocation2 + $0x18] sm:$0xff] %v997_v50  ;;  %v1355_v54 = vadd.f32 %v1354_v53, %v1353_v52  ;;  %v1053_v50 = vadd.f32 (!%p1298_p7), %v1299_v47, %v1030_v46  ;;  %v1054_v52 = vadd.f32 (!%p1298_p7), %v1299_v47, %v1031_v49 }
 0x2dd   : > { %v998_v57 = vadd.f32 %v1355_v54, %v805_v48  ;;  %v1356_v58 = vpop.f32.mrb[10].mxu1  ;;  %1069 = vst [vmem:[%s2405_s6] sm:$0xff] (!%p1298_p7), %v1053_v50  ;;  %1070 = vst [vmem:[%s2405_s6 + $0x8] sm:$0xff] (!%p1298_p7), %v1054_v52 }
 0x2de   : > { %v1357_v59 = vpop.f32.mrb[11].mxu1  ;;  %v1032_v48 = vld [vmem:[#allocation2 + $0x10] sm:$0xff] (!%p1298_p7) }
 0x2df   : > { %1014 = vst [vmem:[#allocation2 + $0x20] sm:$0xff] %v998_v57  ;;  %v1358_v60 = vadd.f32 %v1357_v59, %v1356_v58  ;;  %v1055_v57 = vadd.f32 (!%p1298_p7), %v1299_v47, %v1032_v48 }
 0x2e1   : > { %v999_v61 = vadd.f32 %v1358_v60, %v806_v37  ;;  %v1359_v62 = vpop.f32.mrb[12].mxu1  ;;  %1071 = vst [vmem:[%s2405_s6 + $0x10] sm:$0xff] (!%p1298_p7), %v1055_v57 }
 0x2e2   : > { %v1360_v1 = vpop.f32.mrb[13].mxu1  ;;  %v1033_v53 = vld [vmem:[#allocation2 + $0x18] sm:$0xff] (!%p1298_p7) }
 0x2e3   : > { %1015 = vst [vmem:[#allocation2 + $0x28] sm:$0xff] %v999_v61  ;;  %v1361_v2 = vadd.f32 %v1360_v1, %v1359_v62  ;;  %v1056_v58 = vadd.f32 (!%p1298_p7), %v1299_v47, %v1033_v53 }
 0x2e5   : > { %v1000_v4 = vadd.f32 %v1361_v2, %v807_v63  ;;  %v1362_v0 = vpop.f32.mrb[14].mxu1  ;;  %1072 = vst [vmem:[%s2405_s6 + $0x18] sm:$0xff] (!%p1298_p7), %v1056_v58 }
 0x2e6   : > { %v1363_v55 = vpop.f32.mrb[15].mxu1  ;;  %v1034_v54 = vld [vmem:[#allocation2 + $0x20] sm:$0xff] (!%p1298_p7) }
 0x2e7   : > { %1016 = vst [vmem:[#allocation2 + $0x30] sm:$0xff] %v1000_v4  ;;  %v1364_v51 = vadd.f32 %v1363_v55, %v1362_v0  ;;  %v1057_v37 = vadd.f32 (!%p1298_p7), %v1299_v47, %v1034_v54 }
 0x2e9   : > { %v1001_v6 = vadd.f32 %v1364_v51, %v808_v5  ;;  %v1365_v56 = vpop.f32.mrb[16].mxu1  ;;  %1073 = vst [vmem:[%s2405_s6 + $0x20] sm:$0xff] (!%p1298_p7), %v1057_v37 }
 0x2ea   : > { %v1366_v9 = vpop.f32.mrb[17].mxu1  ;;  %v1035_v59 = vld [vmem:[#allocation2 + $0x28] sm:$0xff] (!%p1298_p7) }
 0x2eb   : > { %1017 = vst [vmem:[#allocation2 + $0x38] sm:$0xff] %v1001_v6  ;;  %v1367_v10 = vadd.f32 %v1366_v9, %v1365_v56  ;;  %v1058_v62 = vadd.f32 (!%p1298_p7), %v1299_v47, %v1035_v59 }
 0x2ed   : > { %v1002_v11 = vadd.f32 %v1367_v10, %v809_v7  ;;  %v1368_v12 = vpop.f32.mrb[18].mxu1  ;;  %1074 = vst [vmem:[%s2405_s6 + $0x28] sm:$0xff] (!%p1298_p7), %v1058_v62 }
 0x2ee   : > { %v1369_v15 = vpop.f32.mrb[19].mxu1  ;;  %v1036_v60 = vld [vmem:[#allocation2 + $0x30] sm:$0xff] (!%p1298_p7) }
 0x2ef   : > { %1018 = vst [vmem:[#allocation2 + $0x40] sm:$0xff] %v1002_v11  ;;  %v1370_v16 = vadd.f32 %v1369_v15, %v1368_v12  ;;  %v1059_v63 = vadd.f32 (!%p1298_p7), %v1299_v47, %v1036_v60 }
 0x2f1   : > { %v1003_v17 = vadd.f32 %v1370_v16, %v810_v14  ;;  %v1371_v18 = vpop.f32.mrb[20].mxu1  ;;  %1075 = vst [vmem:[%s2405_s6 + $0x30] sm:$0xff] (!%p1298_p7), %v1059_v63 }
 0x2f2   : > { %v1372_v3 = vpop.f32.mrb[21].mxu1  ;;  %v1037_v61 = vld [vmem:[#allocation2 + $0x38] sm:$0xff] (!%p1298_p7) }
 0x2f3   : > { %1019 = vst [vmem:[#allocation2 + $0x48] sm:$0xff] %v1003_v17  ;;  %v1373_v20 = vadd.f32 %v1372_v3, %v1371_v18  ;;  %v1060_v1 = vadd.f32 (!%p1298_p7), %v1299_v47, %v1037_v61 }
 0x2f5   : > { %v1004_v21 = vadd.f32 %v1373_v20, %v811_v19  ;;  %v1374_v23 = vpop.f32.mrb[22].mxu1  ;;  %1076 = vst [vmem:[%s2405_s6 + $0x38] sm:$0xff] (!%p1298_p7), %v1060_v1 }
 0x2f6   : > { %v1375_v25 = vpop.f32.mrb[23].mxu1  ;;  %v1038_v2 = vld [vmem:[#allocation2 + $0x40] sm:$0xff] (!%p1298_p7) }
 0x2f7   : > { %1020 = vst [vmem:[#allocation2 + $0x50] sm:$0xff] %v1004_v21  ;;  %v1376_v26 = vadd.f32 %v1375_v25, %v1374_v23  ;;  %v1061_v5 = vadd.f32 (!%p1298_p7), %v1299_v47, %v1038_v2 }
 0x2f9   : > { %v1005_v27 = vadd.f32 %v1376_v26, %v812_v24  ;;  %v1377_v28 = vpop.f32.mrb[24].mxu1  ;;  %1077 = vst [vmem:[%s2405_s6 + $0x40] sm:$0xff] (!%p1298_p7), %v1061_v5 }
 0x2fa   : > { %v1378_v29 = vpop.f32.mrb[25].mxu1  ;;  %v1039_v4 = vld [vmem:[#allocation2 + $0x48] sm:$0xff] (!%p1298_p7) }
 0x2fb   : > { %1021 = vst [vmem:[#allocation2 + $0x58] sm:$0xff] %v1005_v27  ;;  %v1379_v8 = vadd.f32 %v1378_v29, %v1377_v28  ;;  %v1062_v55 = vadd.f32 (!%p1298_p7), %v1299_v47, %v1039_v4 }
 0x2fd   : > { %v1006_v30 = vadd.f32 %v1379_v8, %v813_v13  ;;  %v1380_v31 = vpop.f32.mrb[26].mxu1  ;;  %1078 = vst [vmem:[%s2405_s6 + $0x48] sm:$0xff] (!%p1298_p7), %v1062_v55 }
 0x2fe   : > { %v1381_v33 = vpop.f32.mrb[27].mxu1  ;;  %v1040_v0 = vld [vmem:[#allocation2 + $0x50] sm:$0xff] (!%p1298_p7) }
 0x2ff   : > { %1022 = vst [vmem:[#allocation2 + $0x60] sm:$0xff] %v1006_v30  ;;  %v1382_v35 = vadd.f32 %v1381_v33, %v1380_v31  ;;  %v1063_v51 = vadd.f32 (!%p1298_p7), %v1299_v47, %v1040_v0 }
 0x301   : > { %v1007_v34 = vadd.f32 %v1382_v35, %v814_v32  ;;  %v1383_v36 = vpop.f32.mrb[28].mxu1  ;;  %1079 = vst [vmem:[%s2405_s6 + $0x50] sm:$0xff] (!%p1298_p7), %v1063_v51 }
 0x302   : > { %v1384_v39 = vpop.f32.mrb[29].mxu1  ;;  %v1041_v6 = vld [vmem:[#allocation2 + $0x58] sm:$0xff] (!%p1298_p7) }
 0x303   : > { %1023 = vst [vmem:[#allocation2 + $0x68] sm:$0xff] %v1007_v34  ;;  %v1385_v40 = vadd.f32 %v1384_v39, %v1383_v36  ;;  %v1064_v9 = vadd.f32 (!%p1298_p7), %v1299_v47, %v1041_v6 }
 0x305   : > { %v1008_v41 = vadd.f32 %v1385_v40, %v815_v38  ;;  %v1386_v22 = vpop.f32.mrb[30].mxu1  ;;  %1029 = sbr.rel (%p1298_p7) target bundleno = 790 (0x316), region = 68  ;;  %1080 = vst [vmem:[%s2405_s6 + $0x58] sm:$0xff] (!%p1298_p7), %v1064_v9 }
 0x306   : > { %v1387_v43 = vpop.f32.mrb[31].mxu1  ;;  %v1042_v56 = vld [vmem:[#allocation2 + $0x60] sm:$0xff] (!%p1298_p7) }
 0x307   : > { %1024 = vst [vmem:[#allocation2 + $0x70] sm:$0xff] %v1008_v41  ;;  %v1388_v44 = vadd.f32 %v1387_v43, %v1386_v22  ;;  %v1065_v10 = vadd.f32 (!%p1298_p7), %v1299_v47, %v1042_v56 }
 0x309   : > { %v1009_v45 = vadd.f32 %v1388_v44, %v816_v42  ;;  %1081 = vst [vmem:[%s2405_s6 + $0x60] sm:$0xff] (!%p1298_p7), %v1065_v10 }
 0x30a   : > { %v1043_v7 = vld [vmem:[#allocation2 + $0x68] sm:$0xff] (!%p1298_p7) }
 0x30b   : > { %1025 = vst [vmem:[#allocation2 + $0x78] sm:$0xff] %v1009_v45  ;;  %v1066_v11 = vadd.f32 (!%p1298_p7), %v1299_v47, %v1043_v7 }
 0x30d   : > { %1082 = vst [vmem:[%s2405_s6 + $0x68] sm:$0xff] %v1066_v11 }
 0x30e   : > { %v1044_v12 = vld [vmem:[#allocation2 + $0x70] sm:$0xff] }
 0x30f   : > { %v1067_v15 = vadd.f32 %v1299_v47, %v1044_v12 }
 0x311   : > { %1083 = vst [vmem:[%s2405_s6 + $0x70] sm:$0xff] %v1067_v15 }
 0x312   : > { %v1045_v14 = vld [vmem:[#allocation2 + $0x78] sm:$0xff] }
 0x313   : > { %v1068_v16 = vadd.f32 %v1299_v47, %v1045_v14 }
 0x315   : > { %1084 = vst [vmem:[%s2405_s6 + $0x78] sm:$0xff] %v1068_v16 }
 0x316 PF: > { %s2803_s25 = sld [smem:[#allocation21_spill]]  ;;  %s2804_s13 = sld [smem:[#allocation22_spill]] }
 0x317   : > { %s2805_s5 = sld [smem:[#allocation26_spill]]  ;;  %s1101_s10 = sshll.u32 %s2405_s6, 4  ;;  %s2642_s10 = int_to_ptr.vmem [resolvable:$true] %s1101_s10 }
 0x318   : > { %s2806_s19 = sld [smem:[#allocation33_spill]]  ;;  %s1086_s8 = scalar_lea.sflag [#allocation5], %s2374_s15 }
 0x319   : > { %s1818_s1 = scalar_lea.vmem %s2642_s10, 2048  ;;  %s1982_s12 = smov [#allocation12]  }
 0x31a   : > { %p1819_p10 = scmp.ne.s32.totalorder %s2642_s10, %s1818_s1  ;;  %s1822_s6 = sshll.u32 %s1982_s12, 4  ;;  %s1823_s6 = int_to_ptr.vmem [resolvable:$false] %s1822_s6 }
 0x31b   : > { %s1824_s17 = scalar_lea.vmem %s1823_s6, 4096  ;;  %p1825_p13 = scmp.lt.s32.totalorder %s2642_s10, %s1823_s6 }
 0x31c   : > { %s1301_s9 = sshll.u32 %s2803_s25, 4  ;;  %s1302_s26 = sshll.u32 %s2804_s13, 5 }
 0x31d   : > { %s1098_s16 = sadd.s32 %s1302_s26, %s1301_s9  ;;  %p2808_p6 = scmp.ne.s32.totalorder %s2805_s5, 0 }
 0x31e   : > { %s1303_s4 = sshll.u32 %s1098_s16, 7  ;;  %s2807_s14 = smov %s2806_s19 }
 0x31f   : > { %s2647_s21 = scalar_lea.hbm %s2806_s19, %s1303_s4  ;;  %p1820_p0 = pnand %p1819_p10, %p2808_p6 }
 0x320   : > { %p1826_p8 = scmp.lt.s32.totalorder %s1824_s17, %s1818_s1 }
 0x321   : > { %p1821_p9 = pneg %p1820_p0 }
 0x322   : > { %p1827_p4 = por %p1826_p8, %p1825_p13 }
 0x324   : > { %p1828_p12 = pnand %p1827_p4, %p1821_p9 }
 0x326   : > { %1831 = shalt.err (!%p1828_p12)
}
 0x327   : > { %s1832_s25 = scalar_lea.hbm %s2647_s21, 2048  ;;  %s1836_s26 = scalar_lea.hbm %s2807_s14, 8192 }
 0x328   : > { %p1833_p5 = scmp.ne.s32.totalorder %s2647_s21, %s1832_s25  ;;  %p1837_p2 = scmp.lt.u32.totalorder %s2647_s21, %s2807_s14 }
 0x329   : > { %p1838_p3 = scmp.lt.u32.totalorder %s1836_s26, %s1832_s25  ;;  %p1840_p10 = scmp.lt.u32.totalorder %s1832_s25, %s2647_s21 }
 0x32a   : > { %p1834_p11 = pnand %p1833_p5, %p2808_p6 }
 0x32b   : > { %p1839_p7 = por %p1838_p3, %p1837_p2 }
 0x32c   : > { %p1835_p1 = pneg %p1834_p11 }
 0x32d   : > { %p1841_p0 = por %p1840_p10, %p1839_p7 }
 0x32f   : > { %p1842_p9 = pnand %p1841_p0, %p1835_p1 }
 0x331   : > { %1845 = shalt.err (!%p1842_p9)
}
 0x332   : > { %s1983_s18 = smov 128   ;;  %s1984_s11 = smov 8  }
 0x333   : > { %1465 = dma.vmem_to_hbm [thread:$0]  (%p2808_p6), %s2642_s10, 2048, %s2647_s21, %s1086_s8, %s1983_s18, %s1983_s18, %s1984_s11  }
 0x334 PF: > { %s2809_s19 = sld [smem:[#allocation19_spill]]  ;;  %p1491_p13 = scmp.ge.s32.totalorder %s1968_s30, 2 }
 0x335   : > { %s2810_s1 = sld [smem:[#allocation27_spill]] }
 0x33a   : > { %s1116_s12 = sand.u32 1, %s2809_s19  }
 0x33b   : > { %p2811_p8 = scmp.ne.s32.totalorder %s2810_s1, 0  ;;  %s1117_s6 = scalar_lea.sflag [#allocation5], %s1116_s12 }
 0x33d   : > { %p1485_p4 = pnand %p1491_p13, %p2811_p8 }
 0x33f   : > { %1915 = dma.done.wait (!%p1485_p4), %s1117_s6, 2048  }
 0x340   : > { %1917 = vsyncadd (!%p1485_p4), %s1117_s6, 4294965248  ;;  %s27_s30 = sadd.s32 1, %s1968_s30   ;;  %s2813_s18 = sld [smem:[#allocation18_spill]] }
 0x341   : > { %p2678_p12 = scmp.ge.s32.totalorder %s27_s30, 10   ;;  %s2814_s15 = sld [smem:[#allocation29_spill]] }
 0x342   : > { %s2815_s5 = sld [smem:[#allocation28_spill]]  ;;  %s2816_s10 = smov %s2834_s24 }
 0x343   : > { %s2817_s8 = sld [smem:[#allocation30_spill]]  ;;  %s2818_s19 = smov %s1928_s20 }
 0x344   : > { %s2820_s21 = smov %s1936_s22  ;;  %s2821_s22 = smov %s1940_s23 }
 0x345   : > { %s2822_s23 = smov %s2275_s7  ;;  %s2823_s24 = smov %s1956_s27 }
 0x346   : > { %s2824_s25 = smov %s1960_s28  ;;  %s2825_s26 = smov %s1964_s29 }
 0x347   : > { %s2819_s20 = smov %s2814_s15  ;;  %s2827_s28 = smov %s2816_s10 }
 0x348   : > { %s2826_s27 = smov %s2815_s5  ;;  %26 = sbr.rel (!%p2678_p12) target bundleno = 18 (0x12), region = 134 }
 0x349   : > { %s2828_s29 = smov %s2817_s8 }
 0x34f   :  { %1122 = vsyncpa [#allocation4], 1 }
 0x350   :  { %1124 = vsyncpa [#allocation4 + $0x1], 1 }
 0x351   :  { %1125 = vsyncpa [#allocation7], 1 }
 0x352   :  { %1127 = vsyncpa [#allocation7 + $0x1], 1 }
 0x353   :  { %1128 = vsyncpa [#allocation10], 1 }
 0x354   :  { %1130 = vsyncpa [#allocation10 + $0x1], 1 }
 0x355   :  { %1131 = vsyncpa [#allocation5], 1 }
 0x356   :  { %1133 = vsyncpa [#allocation5 + $0x1], 1 }

</bundles_post_ra>
